<compile_context>
chip_gen: v6e
topology: v6e:2x2x1
jax: 0.10.0
libtpu: 0.0.40
codegen_flags: <defaults>
</compile_context>

<pallas_src>
import jax
import jax.numpy as jnp
from jax.experimental import pallas as pl
from jax.experimental.pallas import tpu as pltpu

H = 160   # lstm_hidden_dim (hardcoded in nn.LSTM(...))
L = 3     # lstm_layers     (hardcoded in nn.LSTM(...))


def _sigmoid(x):
    # exp goes to the EUP; the divide is negligible at this size.
    return 1.0 / (1.0 + jnp.exp(-x))


def _softplus(x):
    # numerically stable softplus, matches torch.nn.Softplus (beta=1)
    return jnp.maximum(x, 0.0) + jnp.log1p(jnp.exp(-jnp.abs(x)))


def deepar_step_kernel(x_ref, h0_ref, c0_ref, wih0_ref, wih_ref, whh_ref, b_ref,
                       wh_ref, bh_ref, head_ref, hN_ref, cN_ref):
    """One LSTM time step through L stacked layers + fused mu/sigma head.

    x_ref    : [B, in_dim]      layer-0 input (in_dim = enc_in+4, no zero padding)
    h0/c0    : [L, B, H]        previous hidden / cell state (f32)
    wih0_ref : [in_dim, 4H]     layer-0 input->gates weights, transposed (bf16)
    wih_ref  : [L-1, H, 4H]     layers 1.. input->gates weights, transposed (bf16)
    whh_ref  : [L, H, 4H]       hidden->gates weights, transposed (bf16)
    b_ref    : [L, 1, 4H]       b_ih + b_hh (forget-gate slice filled with 1.0 each) (f32)
    wh_ref   : [L, H, 2C]       fused [mu | presigma] head weights, per layer (bf16)
    bh_ref   : [1, 2C]          fused head bias (f32)
    outputs  : head [B, 2C] (mu | softplus(presigma)), hidden [L,B,H], cell [L,B,H]
    """
    cdim = head_ref.shape[-1] // 2
    head = bh_ref[...]                             # [1, 2C], broadcasts over batch
    layer_in = x_ref[...].astype(jnp.bfloat16)     # bf16 operands for the MXU only

    for l in range(L):                             # static unroll over 3 layers
        w_in = wih0_ref[...] if l == 0 else wih_ref[l - 1]
        gates = (
            jnp.dot(layer_in, w_in, preferred_element_type=jnp.float32)
            + jnp.dot(h0_ref[l].astype(jnp.bfloat16), whh_ref[l],
                      preferred_element_type=jnp.float32)
            + b_ref[l]                             # [1, 4H] broadcasts over batch
        )                                          # f32 [B, 4H]; PyTorch gate order i, f, g, o
        i_f = _sigmoid(gates[:, :2 * H])           # sigmoid over i|f in one pass
        g = jnp.tanh(gates[:, 2 * H:3 * H])
        o = _sigmoid(gates[:, 3 * H:])
        c_new = i_f[:, H:] * c0_ref[l] + i_f[:, :H] * g
        h_new = o * jnp.tanh(c_new)
        hN_ref[l] = h_new
        cN_ref[l] = c_new
        h_bf = h_new.astype(jnp.bfloat16)
        # fused distribution heads over hidden.permute(1,2,0).reshape(B, H*L)
        head = head + jnp.dot(h_bf, wh_ref[l], preferred_element_type=jnp.float32)
        layer_in = h_bf

    col = jax.lax.broadcasted_iota(jnp.int32, head.shape, 1)
    head_ref[...] = jnp.where(col < cdim, head, _softplus(head))


def init_params(key, enc_in, c_out):
    """Deterministic synthetic parameters mimicking the torch module's shapes/init."""
    input_size = enc_in + 4
    ks = jax.random.split(key, 4 * L + 4)
    ki = 0
    scale = 1.0 / jnp.sqrt(jnp.float32(H))

    wih0 = None
    wih, whh, bias = [], [], []
    for l in range(L):
        in_dim = input_size if l == 0 else H
        w_ih = jax.random.uniform(ks[ki], (4 * H, in_dim), jnp.float32, -scale, scale); ki += 1
        w_hh = jax.random.uniform(ks[ki], (4 * H, H), jnp.float32, -scale, scale);      ki += 1
        b_ih = jax.random.uniform(ks[ki], (4 * H,), jnp.float32, -scale, scale);        ki += 1
        b_hh = jax.random.uniform(ks[ki], (4 * H,), jnp.float32, -scale, scale);        ki += 1
        # module __init__ fills the forget-gate slice of every bias tensor with 1.0
        b_ih = b_ih.at[H:2 * H].set(1.0)
        b_hh = b_hh.at[H:2 * H].set(1.0)
        if l == 0:
            wih0 = w_ih.T.astype(jnp.bfloat16)           # [in_dim, 4H]
        else:
            wih.append(w_ih.T.astype(jnp.bfloat16))      # [H, 4H]
        whh.append(w_hh.T.astype(jnp.bfloat16))
        bias.append((b_ih + b_hh)[None, :])              # f32 [1, 4H]

    lin_scale = 1.0 / jnp.sqrt(jnp.float32(H * L))
    W_mu = jax.random.uniform(ks[ki], (c_out, H * L), jnp.float32, -lin_scale, lin_scale); ki += 1
    b_mu = jax.random.uniform(ks[ki], (c_out,), jnp.float32, -lin_scale, lin_scale);       ki += 1
    W_ps = jax.random.uniform(ks[ki], (c_out, H * L), jnp.float32, -lin_scale, lin_scale); ki += 1
    b_ps = jax.random.uniform(ks[ki], (c_out,), jnp.float32, -lin_scale, lin_scale);       ki += 1

    # hidden_permute column j corresponds to (hd, layer) with j = hd*L + layer,
    # so gather per-layer [H, C] slabs and fuse mu|presigma along the output axis.
    wmu_k = jnp.transpose(W_mu.reshape(c_out, H, L), (2, 1, 0))   # [L, H, C]
    wps_k = jnp.transpose(W_ps.reshape(c_out, H, L), (2, 1, 0))   # [L, H, C]
    w_head = jnp.concatenate([wmu_k, wps_k], axis=-1).astype(jnp.bfloat16)  # [L, H, 2C]
    b_head = jnp.concatenate([b_mu, b_ps])[None, :]                          # [1, 2C] f32

    return dict(wih0=wih0, wih=jnp.stack(wih), whh=jnp.stack(whh),
                b=jnp.stack(bias), w_head=w_head, b_head=b_head)


@jax.jit
def deepar_forward(x, hidden, cell, wih0, wih, whh, b, w_head, b_head):
    """x: [1, B, enc_in+4], hidden/cell: [L, B, H].  Returns (mu, sigma, hidden, cell)."""
    B = x.shape[1]
    two_c = b_head.shape[-1]
    x2 = x[0]                                     # [B, enc_in+4] — no zero padding

    vmem = pl.BlockSpec(memory_space=pltpu.MemorySpace.VMEM)
    head, hN, cN = pl.pallas_call(
        deepar_step_kernel,
        out_shape=(
            jax.ShapeDtypeStruct((B, two_c), jnp.float32),
            jax.ShapeDtypeStruct((L, B, H), jnp.float32),
            jax.ShapeDtypeStruct((L, B, H), jnp.float32),
        ),
        in_specs=[vmem] * 9,
        out_specs=(vmem, vmem, vmem),
        input_output_aliases={1: 1, 2: 2},        # hidden -> hN, cell -> cN (in-place state)
    )(x2, hidden, cell, wih0, wih, whh, b, w_head, b_head)

    c_out = two_c // 2
    # torch.squeeze(mu) / torch.squeeze(sigma)
    return jnp.squeeze(head[:, :c_out]), jnp.squeeze(head[:, c_out:]), hN, cN


def _reference(x, hidden, cell, p):
    """Pure-JAX reference of the same math path (bf16 MXU operands, f32 accumulation)."""
    x2 = x[0]
    layer_in = x2.astype(jnp.bfloat16)
    h_list, c_list = [], []
    for l in range(L):
        w_in = p["wih0"] if l == 0 else p["wih"][l - 1]
        gates = (jnp.dot(layer_in, w_in, preferred_element_type=jnp.float32)
                 + jnp.dot(hidden[l].astype(jnp.bfloat16), p["whh"][l],
                           preferred_element_type=jnp.float32)
                 + p["b"][l])
        i = _sigmoid(gates[:, 0 * H:1 * H])
        f = _sigmoid(gates[:, 1 * H:2 * H])
        g = jnp.tanh(gates[:, 2 * H:3 * H])
        o = _sigmoid(gates[:, 3 * H:4 * H])
        c_new = f * cell[l] + i * g
        h_new = o * jnp.tanh(c_new)
        h_list.append(h_new); c_list.append(c_new)
        layer_in = h_new.astype(jnp.bfloat16)
    hN = jnp.stack(h_list); cN = jnp.stack(c_list)
    head = p["b_head"] + sum(
        jnp.dot(h_list[l].astype(jnp.bfloat16), p["w_head"][l],
                preferred_element_type=jnp.float32) for l in range(L))
    c_out = head.shape[-1] // 2
    return (jnp.squeeze(head[:, :c_out]), jnp.squeeze(_softplus(head[:, c_out:])), hN, cN)


if __name__ == "__main__":
    enc_in, c_out, B = 4, 1, 2
    key = jax.random.PRNGKey(0)
    k_p, k_x, k_h, k_c = jax.random.split(key, 4)

    params = init_params(k_p, enc_in, c_out)
    x = jax.random.normal(k_x, (1, B, enc_in + 4), jnp.float32)        # [1, B, 1+cov_dim]
    hidden = 0.1 * jax.random.normal(k_h, (L, B, H), jnp.float32)      # [layers, B, H]
    cell = 0.1 * jax.random.normal(k_c, (L, B, H), jnp.float32)        # [layers, B, H]

    mu, sigma, hN, cN = deepar_forward(
        x, hidden, cell,
        params["wih0"], params["wih"], params["whh"], params["b"],
        params["w_head"], params["b_head"])
    jax.block_until_ready((mu, sigma, hN, cN))

    mu_r, sig_r, hN_r, cN_r = _reference(x, hidden, cell, params)
    assert jnp.allclose(mu, mu_r, atol=2e-3, rtol=2e-3)
    assert jnp.allclose(sigma, sig_r, atol=2e-3, rtol=2e-3)
    assert jnp.allclose(hN, hN_r, atol=2e-3, rtol=2e-3)
    assert jnp.allclose(cN, cN_r, atol=2e-3, rtol=2e-3)
    assert mu.shape == (B,) and sigma.shape == (B,)
    assert hN.shape == (L, B, H) and cN.shape == (L, B, H)
    print("KERNEL_OK")
</pallas_src>

<mosaic_0001>
module attributes {stable_mosaic.version = 11 : i64} {
  func.func @deepar_step_kernel(%arg0: memref<2x8xf32, #tpu.memory_space<vmem>>, %arg1: memref<3x2x160xf32, #tpu.memory_space<vmem>>, %arg2: memref<3x2x160xf32, #tpu.memory_space<vmem>>, %arg3: memref<8x640xbf16, #tpu.memory_space<vmem>>, %arg4: memref<2x160x640xbf16, #tpu.memory_space<vmem>>, %arg5: memref<3x160x640xbf16, #tpu.memory_space<vmem>>, %arg6: memref<3x1x640xf32, #tpu.memory_space<vmem>>, %arg7: memref<3x160x2xbf16, #tpu.memory_space<vmem>>, %arg8: memref<1x2xf32, #tpu.memory_space<vmem>>, %arg9: memref<2x2xf32, #tpu.memory_space<vmem>>, %arg10: memref<3x2x160xf32, #tpu.memory_space<vmem>>, %arg11: memref<3x2x160xf32, #tpu.memory_space<vmem>>) attributes {dimension_semantics = [], scalar_prefetch = 0 : i64, scratch_operands = 0 : i64, tpu.core_type = #tpu.core_type<tc>} {
    %c0 = arith.constant 0 : index
    %c0_0 = arith.constant 0 : index
    %0 = vector.load %arg8[%c0, %c0_0] : memref<1x2xf32, #tpu.memory_space<vmem>>, vector<1x2xf32>
    %c0_1 = arith.constant 0 : index
    %c0_2 = arith.constant 0 : index
    %1 = vector.load %arg0[%c0_1, %c0_2] : memref<2x8xf32, #tpu.memory_space<vmem>>, vector<2x8xf32>
    %2 = arith.truncf %1 : vector<2x8xf32> to vector<2x8xbf16>
    %c0_3 = arith.constant 0 : index
    %c0_4 = arith.constant 0 : index
    %3 = vector.load %arg3[%c0_3, %c0_4] : memref<8x640xbf16, #tpu.memory_space<vmem>>, vector<8x640xbf16>
    %cst = arith.constant dense<0.000000e+00> : vector<2x640xf32>
    %4 = tpu.matmul %2, %3, %cst {dimension_numbers = #tpu.dot_dimension_numbers<[1], [0], [0], [1], [0, 0, 1, 1], [], []>} : vector<2x8xbf16>, vector<8x640xbf16>, vector<2x640xf32> -> vector<2x640xf32>
    %c0_5 = arith.constant 0 : index
    %c0_6 = arith.constant 0 : index
    %c0_7 = arith.constant 0 : index
    %5 = vector.load %arg1[%c0_5, %c0_6, %c0_7] : memref<3x2x160xf32, #tpu.memory_space<vmem>>, vector<1x2x160xf32>
    %6 = vector.shape_cast %5 : vector<1x2x160xf32> to vector<2x160xf32>
    %7 = arith.truncf %6 : vector<2x160xf32> to vector<2x160xbf16>
    %c0_8 = arith.constant 0 : index
    %c0_9 = arith.constant 0 : index
    %c0_10 = arith.constant 0 : index
    %8 = vector.load %arg5[%c0_8, %c0_9, %c0_10] : memref<3x160x640xbf16, #tpu.memory_space<vmem>>, vector<1x160x640xbf16>
    %9 = vector.shape_cast %8 : vector<1x160x640xbf16> to vector<160x640xbf16>
    %cst_11 = arith.constant dense<0.000000e+00> : vector<2x640xf32>
    %10 = tpu.matmul %7, %9, %cst_11 {dimension_numbers = #tpu.dot_dimension_numbers<[1], [0], [0], [1], [0, 0, 1, 1], [], []>} : vector<2x160xbf16>, vector<160x640xbf16>, vector<2x640xf32> -> vector<2x640xf32>
    %11 = arith.addf %4, %10 : vector<2x640xf32>
    %c0_12 = arith.constant 0 : index
    %c0_13 = arith.constant 0 : index
    %c0_14 = arith.constant 0 : index
    %12 = vector.load %arg6[%c0_12, %c0_13, %c0_14] : memref<3x1x640xf32, #tpu.memory_space<vmem>>, vector<1x1x640xf32>
    %13 = vector.shape_cast %12 : vector<1x1x640xf32> to vector<1x640xf32>
    %14 = vector.broadcast %13 : vector<1x640xf32> to vector<2x640xf32>
    %15 = arith.addf %11, %14 : vector<2x640xf32>
    %16 = vector.extract_strided_slice %15 {offsets = [0, 0], sizes = [2, 320], strides = [1, 1]} : vector<2x640xf32> to vector<2x320xf32>
    %cst_15 = arith.constant 0.000000e+00 : f32
    %17 = vector.broadcast %cst_15 : f32 to vector<2x320xf32>
    %18 = arith.subf %17, %16 : vector<2x320xf32>
    %19 = math.exp %18 : vector<2x320xf32>
    %cst_16 = arith.constant 1.000000e+00 : f32
    %20 = vector.broadcast %cst_16 : f32 to vector<2x320xf32>
    %21 = arith.addf %20, %19 : vector<2x320xf32>
    %cst_17 = arith.constant 1.000000e+00 : f32
    %22 = vector.broadcast %cst_17 : f32 to vector<2x320xf32>
    %23 = arith.divf %22, %21 : vector<2x320xf32>
    %24 = vector.extract_strided_slice %15 {offsets = [0, 320], sizes = [2, 160], strides = [1, 1]} : vector<2x640xf32> to vector<2x160xf32>
    %25 = math.tanh %24 : vector<2x160xf32>
    %26 = vector.extract_strided_slice %15 {offsets = [0, 480], sizes = [2, 160], strides = [1, 1]} : vector<2x640xf32> to vector<2x160xf32>
    %cst_18 = arith.constant 0.000000e+00 : f32
    %27 = vector.broadcast %cst_18 : f32 to vector<2x160xf32>
    %28 = arith.subf %27, %26 : vector<2x160xf32>
    %29 = math.exp %28 : vector<2x160xf32>
    %cst_19 = arith.constant 1.000000e+00 : f32
    %30 = vector.broadcast %cst_19 : f32 to vector<2x160xf32>
    %31 = arith.addf %30, %29 : vector<2x160xf32>
    %cst_20 = arith.constant 1.000000e+00 : f32
    %32 = vector.broadcast %cst_20 : f32 to vector<2x160xf32>
    %33 = arith.divf %32, %31 : vector<2x160xf32>
    %34 = vector.extract_strided_slice %23 {offsets = [0, 160], sizes = [2, 160], strides = [1, 1]} : vector<2x320xf32> to vector<2x160xf32>
    %c0_21 = arith.constant 0 : index
    %c0_22 = arith.constant 0 : index
    %c0_23 = arith.constant 0 : index
    %35 = vector.load %arg2[%c0_21, %c0_22, %c0_23] : memref<3x2x160xf32, #tpu.memory_space<vmem>>, vector<1x2x160xf32>
    %36 = vector.shape_cast %35 : vector<1x2x160xf32> to vector<2x160xf32>
    %37 = arith.mulf %34, %36 : vector<2x160xf32>
    %38 = vector.extract_strided_slice %23 {offsets = [0, 0], sizes = [2, 160], strides = [1, 1]} : vector<2x320xf32> to vector<2x160xf32>
    %39 = arith.mulf %38, %25 : vector<2x160xf32>
    %40 = arith.addf %37, %39 : vector<2x160xf32>
    %41 = math.tanh %40 : vector<2x160xf32>
    %42 = arith.mulf %33, %41 : vector<2x160xf32>
    %c0_24 = arith.constant 0 : index
    %c0_25 = arith.constant 0 : index
    %c0_26 = arith.constant 0 : index
    %43 = vector.load %arg10[%c0_24, %c0_25, %c0_26] : memref<3x2x160xf32, #tpu.memory_space<vmem>>, vector<1x2x160xf32>
    %44 = vector.shape_cast %43 : vector<1x2x160xf32> to vector<2x160xf32>
    %45 = vector.shape_cast %42 : vector<2x160xf32> to vector<1x2x160xf32>
    tpu.vector_store %arg10[%c0_24, %c0_25, %c0_26], %45 {strides = array<i32>} : memref<3x2x160xf32, #tpu.memory_space<vmem>>, vector<1x2x160xf32>,
    %c0_27 = arith.constant 0 : index
    %c0_28 = arith.constant 0 : index
    %c0_29 = arith.constant 0 : index
    %46 = vector.load %arg11[%c0_27, %c0_28, %c0_29] : memref<3x2x160xf32, #tpu.memory_space<vmem>>, vector<1x2x160xf32>
    %47 = vector.shape_cast %46 : vector<1x2x160xf32> to vector<2x160xf32>
    %48 = vector.shape_cast %40 : vector<2x160xf32> to vector<1x2x160xf32>
    tpu.vector_store %arg11[%c0_27, %c0_28, %c0_29], %48 {strides = array<i32>} : memref<3x2x160xf32, #tpu.memory_space<vmem>>, vector<1x2x160xf32>,
    %49 = arith.truncf %42 : vector<2x160xf32> to vector<2x160xbf16>
    %c0_30 = arith.constant 0 : index
    %c0_31 = arith.constant 0 : index
    %c0_32 = arith.constant 0 : index
    %50 = vector.load %arg7[%c0_30, %c0_31, %c0_32] : memref<3x160x2xbf16, #tpu.memory_space<vmem>>, vector<1x160x2xbf16>
    %51 = vector.shape_cast %50 : vector<1x160x2xbf16> to vector<160x2xbf16>
    %cst_33 = arith.constant dense<0.000000e+00> : vector<2x2xf32>
    %52 = tpu.matmul %49, %51, %cst_33 {dimension_numbers = #tpu.dot_dimension_numbers<[1], [0], [0], [1], [0, 0, 1, 1], [], []>} : vector<2x160xbf16>, vector<160x2xbf16>, vector<2x2xf32> -> vector<2x2xf32>
    %53 = vector.broadcast %0 : vector<1x2xf32> to vector<2x2xf32>
    %54 = arith.addf %53, %52 : vector<2x2xf32>
    %c0_34 = arith.constant 0 : index
    %c0_35 = arith.constant 0 : index
    %c0_36 = arith.constant 0 : index
    %55 = vector.load %arg4[%c0_34, %c0_35, %c0_36] : memref<2x160x640xbf16, #tpu.memory_space<vmem>>, vector<1x160x640xbf16>
    %56 = vector.shape_cast %55 : vector<1x160x640xbf16> to vector<160x640xbf16>
    %cst_37 = arith.constant dense<0.000000e+00> : vector<2x640xf32>
    %57 = tpu.matmul %49, %56, %cst_37 {dimension_numbers = #tpu.dot_dimension_numbers<[1], [0], [0], [1], [0, 0, 1, 1], [], []>} : vector<2x160xbf16>, vector<160x640xbf16>, vector<2x640xf32> -> vector<2x640xf32>
    %c1 = arith.constant 1 : index
    %c0_38 = arith.constant 0 : index
    %c0_39 = arith.constant 0 : index
    %58 = vector.load %arg1[%c1, %c0_38, %c0_39] : memref<3x2x160xf32, #tpu.memory_space<vmem>>, vector<1x2x160xf32>
    %59 = vector.shape_cast %58 : vector<1x2x160xf32> to vector<2x160xf32>
    %60 = arith.truncf %59 : vector<2x160xf32> to vector<2x160xbf16>
    %c1_40 = arith.constant 1 : index
    %c0_41 = arith.constant 0 : index
    %c0_42 = arith.constant 0 : index
    %61 = vector.load %arg5[%c1_40, %c0_41, %c0_42] : memref<3x160x640xbf16, #tpu.memory_space<vmem>>, vector<1x160x640xbf16>
    %62 = vector.shape_cast %61 : vector<1x160x640xbf16> to vector<160x640xbf16>
    %cst_43 = arith.constant dense<0.000000e+00> : vector<2x640xf32>
    %63 = tpu.matmul %60, %62, %cst_43 {dimension_numbers = #tpu.dot_dimension_numbers<[1], [0], [0], [1], [0, 0, 1, 1], [], []>} : vector<2x160xbf16>, vector<160x640xbf16>, vector<2x640xf32> -> vector<2x640xf32>
    %64 = arith.addf %57, %63 : vector<2x640xf32>
    %c1_44 = arith.constant 1 : index
    %c0_45 = arith.constant 0 : index
    %c0_46 = arith.constant 0 : index
    %65 = vector.load %arg6[%c1_44, %c0_45, %c0_46] : memref<3x1x640xf32, #tpu.memory_space<vmem>>, vector<1x1x640xf32>
    %66 = vector.shape_cast %65 : vector<1x1x640xf32> to vector<1x640xf32>
    %67 = vector.broadcast %66 : vector<1x640xf32> to vector<2x640xf32>
    %68 = arith.addf %64, %67 : vector<2x640xf32>
    %69 = vector.extract_strided_slice %68 {offsets = [0, 0], sizes = [2, 320], strides = [1, 1]} : vector<2x640xf32> to vector<2x320xf32>
    %cst_47 = arith.constant 0.000000e+00 : f32
    %70 = vector.broadcast %cst_47 : f32 to vector<2x320xf32>
    %71 = arith.subf %70, %69 : vector<2x320xf32>
    %72 = math.exp %71 : vector<2x320xf32>
    %cst_48 = arith.constant 1.000000e+00 : f32
    %73 = vector.broadcast %cst_48 : f32 to vector<2x320xf32>
    %74 = arith.addf %73, %72 : vector<2x320xf32>
    %cst_49 = arith.constant 1.000000e+00 : f32
    %75 = vector.broadcast %cst_49 : f32 to vector<2x320xf32>
    %76 = arith.divf %75, %74 : vector<2x320xf32>
    %77 = vector.extract_strided_slice %68 {offsets = [0, 320], sizes = [2, 160], strides = [1, 1]} : vector<2x640xf32> to vector<2x160xf32>
    %78 = math.tanh %77 : vector<2x160xf32>
    %79 = vector.extract_strided_slice %68 {offsets = [0, 480], sizes = [2, 160], strides = [1, 1]} : vector<2x640xf32> to vector<2x160xf32>
    %cst_50 = arith.constant 0.000000e+00 : f32
    %80 = vector.broadcast %cst_50 : f32 to vector<2x160xf32>
    %81 = arith.subf %80, %79 : vector<2x160xf32>
    %82 = math.exp %81 : vector<2x160xf32>
    %cst_51 = arith.constant 1.000000e+00 : f32
    %83 = vector.broadcast %cst_51 : f32 to vector<2x160xf32>
    %84 = arith.addf %83, %82 : vector<2x160xf32>
    %cst_52 = arith.constant 1.000000e+00 : f32
    %85 = vector.broadcast %cst_52 : f32 to vector<2x160xf32>
    %86 = arith.divf %85, %84 : vector<2x160xf32>
    %87 = vector.extract_strided_slice %76 {offsets = [0, 160], sizes = [2, 160], strides = [1, 1]} : vector<2x320xf32> to vector<2x160xf32>
    %c1_53 = arith.constant 1 : index
    %c0_54 = arith.constant 0 : index
    %c0_55 = arith.constant 0 : index
    %88 = vector.load %arg2[%c1_53, %c0_54, %c0_55] : memref<3x2x160xf32, #tpu.memory_space<vmem>>, vector<1x2x160xf32>
    %89 = vector.shape_cast %88 : vector<1x2x160xf32> to vector<2x160xf32>
    %90 = arith.mulf %87, %89 : vector<2x160xf32>
    %91 = vector.extract_strided_slice %76 {offsets = [0, 0], sizes = [2, 160], strides = [1, 1]} : vector<2x320xf32> to vector<2x160xf32>
    %92 = arith.mulf %91, %78 : vector<2x160xf32>
    %93 = arith.addf %90, %92 : vector<2x160xf32>
    %94 = math.tanh %93 : vector<2x160xf32>
    %95 = arith.mulf %86, %94 : vector<2x160xf32>
    %c1_56 = arith.constant 1 : index
    %c0_57 = arith.constant 0 : index
    %c0_58 = arith.constant 0 : index
    %96 = vector.load %arg10[%c1_56, %c0_57, %c0_58] : memref<3x2x160xf32, #tpu.memory_space<vmem>>, vector<1x2x160xf32>
    %97 = vector.shape_cast %96 : vector<1x2x160xf32> to vector<2x160xf32>
    %98 = vector.shape_cast %95 : vector<2x160xf32> to vector<1x2x160xf32>
    tpu.vector_store %arg10[%c1_56, %c0_57, %c0_58], %98 {strides = array<i32>} : memref<3x2x160xf32, #tpu.memory_space<vmem>>, vector<1x2x160xf32>,
    %c1_59 = arith.constant 1 : index
    %c0_60 = arith.constant 0 : index
    %c0_61 = arith.constant 0 : index
    %99 = vector.load %arg11[%c1_59, %c0_60, %c0_61] : memref<3x2x160xf32, #tpu.memory_space<vmem>>, vector<1x2x160xf32>
    %100 = vector.shape_cast %99 : vector<1x2x160xf32> to vector<2x160xf32>
    %101 = vector.shape_cast %93 : vector<2x160xf32> to vector<1x2x160xf32>
    tpu.vector_store %arg11[%c1_59, %c0_60, %c0_61], %101 {strides = array<i32>} : memref<3x2x160xf32, #tpu.memory_space<vmem>>, vector<1x2x160xf32>,
    %102 = arith.truncf %95 : vector<2x160xf32> to vector<2x160xbf16>
    %c1_62 = arith.constant 1 : index
    %c0_63 = arith.constant 0 : index
    %c0_64 = arith.constant 0 : index
    %103 = vector.load %arg7[%c1_62, %c0_63, %c0_64] : memref<3x160x2xbf16, #tpu.memory_space<vmem>>, vector<1x160x2xbf16>
    %104 = vector.shape_cast %103 : vector<1x160x2xbf16> to vector<160x2xbf16>
    %cst_65 = arith.constant dense<0.000000e+00> : vector<2x2xf32>
    %105 = tpu.matmul %102, %104, %cst_65 {dimension_numbers = #tpu.dot_dimension_numbers<[1], [0], [0], [1], [0, 0, 1, 1], [], []>} : vector<2x160xbf16>, vector<160x2xbf16>, vector<2x2xf32> -> vector<2x2xf32>
    %106 = arith.addf %54, %105 : vector<2x2xf32>
    %c1_66 = arith.constant 1 : index
    %c0_67 = arith.constant 0 : index
    %c0_68 = arith.constant 0 : index
    %107 = vector.load %arg4[%c1_66, %c0_67, %c0_68] : memref<2x160x640xbf16, #tpu.memory_space<vmem>>, vector<1x160x640xbf16>
    %108 = vector.shape_cast %107 : vector<1x160x640xbf16> to vector<160x640xbf16>
    %cst_69 = arith.constant dense<0.000000e+00> : vector<2x640xf32>
    %109 = tpu.matmul %102, %108, %cst_69 {dimension_numbers = #tpu.dot_dimension_numbers<[1], [0], [0], [1], [0, 0, 1, 1], [], []>} : vector<2x160xbf16>, vector<160x640xbf16>, vector<2x640xf32> -> vector<2x640xf32>
    %c2 = arith.constant 2 : index
    %c0_70 = arith.constant 0 : index
    %c0_71 = arith.constant 0 : index
    %110 = vector.load %arg1[%c2, %c0_70, %c0_71] : memref<3x2x160xf32, #tpu.memory_space<vmem>>, vector<1x2x160xf32>
    %111 = vector.shape_cast %110 : vector<1x2x160xf32> to vector<2x160xf32>
    %112 = arith.truncf %111 : vector<2x160xf32> to vector<2x160xbf16>
    %c2_72 = arith.constant 2 : index
    %c0_73 = arith.constant 0 : index
    %c0_74 = arith.constant 0 : index
    %113 = vector.load %arg5[%c2_72, %c0_73, %c0_74] : memref<3x160x640xbf16, #tpu.memory_space<vmem>>, vector<1x160x640xbf16>
    %114 = vector.shape_cast %113 : vector<1x160x640xbf16> to vector<160x640xbf16>
    %cst_75 = arith.constant dense<0.000000e+00> : vector<2x640xf32>
    %115 = tpu.matmul %112, %114, %cst_75 {dimension_numbers = #tpu.dot_dimension_numbers<[1], [0], [0], [1], [0, 0, 1, 1], [], []>} : vector<2x160xbf16>, vector<160x640xbf16>, vector<2x640xf32> -> vector<2x640xf32>
    %116 = arith.addf %109, %115 : vector<2x640xf32>
    %c2_76 = arith.constant 2 : index
    %c0_77 = arith.constant 0 : index
    %c0_78 = arith.constant 0 : index
    %117 = vector.load %arg6[%c2_76, %c0_77, %c0_78] : memref<3x1x640xf32, #tpu.memory_space<vmem>>, vector<1x1x640xf32>
    %118 = vector.shape_cast %117 : vector<1x1x640xf32> to vector<1x640xf32>
    %119 = vector.broadcast %118 : vector<1x640xf32> to vector<2x640xf32>
    %120 = arith.addf %116, %119 : vector<2x640xf32>
    %121 = vector.extract_strided_slice %120 {offsets = [0, 0], sizes = [2, 320], strides = [1, 1]} : vector<2x640xf32> to vector<2x320xf32>
    %cst_79 = arith.constant 0.000000e+00 : f32
    %122 = vector.broadcast %cst_79 : f32 to vector<2x320xf32>
    %123 = arith.subf %122, %121 : vector<2x320xf32>
    %124 = math.exp %123 : vector<2x320xf32>
    %cst_80 = arith.constant 1.000000e+00 : f32
    %125 = vector.broadcast %cst_80 : f32 to vector<2x320xf32>
    %126 = arith.addf %125, %124 : vector<2x320xf32>
    %cst_81 = arith.constant 1.000000e+00 : f32
    %127 = vector.broadcast %cst_81 : f32 to vector<2x320xf32>
    %128 = arith.divf %127, %126 : vector<2x320xf32>
    %129 = vector.extract_strided_slice %120 {offsets = [0, 320], sizes = [2, 160], strides = [1, 1]} : vector<2x640xf32> to vector<2x160xf32>
    %130 = math.tanh %129 : vector<2x160xf32>
    %131 = vector.extract_strided_slice %120 {offsets = [0, 480], sizes = [2, 160], strides = [1, 1]} : vector<2x640xf32> to vector<2x160xf32>
    %cst_82 = arith.constant 0.000000e+00 : f32
    %132 = vector.broadcast %cst_82 : f32 to vector<2x160xf32>
    %133 = arith.subf %132, %131 : vector<2x160xf32>
    %134 = math.exp %133 : vector<2x160xf32>
    %cst_83 = arith.constant 1.000000e+00 : f32
    %135 = vector.broadcast %cst_83 : f32 to vector<2x160xf32>
    %136 = arith.addf %135, %134 : vector<2x160xf32>
    %cst_84 = arith.constant 1.000000e+00 : f32
    %137 = vector.broadcast %cst_84 : f32 to vector<2x160xf32>
    %138 = arith.divf %137, %136 : vector<2x160xf32>
    %139 = vector.extract_strided_slice %128 {offsets = [0, 160], sizes = [2, 160], strides = [1, 1]} : vector<2x320xf32> to vector<2x160xf32>
    %c2_85 = arith.constant 2 : index
    %c0_86 = arith.constant 0 : index
    %c0_87 = arith.constant 0 : index
    %140 = vector.load %arg2[%c2_85, %c0_86, %c0_87] : memref<3x2x160xf32, #tpu.memory_space<vmem>>, vector<1x2x160xf32>
    %141 = vector.shape_cast %140 : vector<1x2x160xf32> to vector<2x160xf32>
    %142 = arith.mulf %139, %141 : vector<2x160xf32>
    %143 = vector.extract_strided_slice %128 {offsets = [0, 0], sizes = [2, 160], strides = [1, 1]} : vector<2x320xf32> to vector<2x160xf32>
    %144 = arith.mulf %143, %130 : vector<2x160xf32>
    %145 = arith.addf %142, %144 : vector<2x160xf32>
    %146 = math.tanh %145 : vector<2x160xf32>
    %147 = arith.mulf %138, %146 : vector<2x160xf32>
    %c2_88 = arith.constant 2 : index
    %c0_89 = arith.constant 0 : index
    %c0_90 = arith.constant 0 : index
    %148 = vector.load %arg10[%c2_88, %c0_89, %c0_90] : memref<3x2x160xf32, #tpu.memory_space<vmem>>, vector<1x2x160xf32>
    %149 = vector.shape_cast %148 : vector<1x2x160xf32> to vector<2x160xf32>
    %150 = vector.shape_cast %147 : vector<2x160xf32> to vector<1x2x160xf32>
    tpu.vector_store %arg10[%c2_88, %c0_89, %c0_90], %150 {strides = array<i32>} : memref<3x2x160xf32, #tpu.memory_space<vmem>>, vector<1x2x160xf32>,
    %c2_91 = arith.constant 2 : index
    %c0_92 = arith.constant 0 : index
    %c0_93 = arith.constant 0 : index
    %151 = vector.load %arg11[%c2_91, %c0_92, %c0_93] : memref<3x2x160xf32, #tpu.memory_space<vmem>>, vector<1x2x160xf32>
    %152 = vector.shape_cast %151 : vector<1x2x160xf32> to vector<2x160xf32>
    %153 = vector.shape_cast %145 : vector<2x160xf32> to vector<1x2x160xf32>
    tpu.vector_store %arg11[%c2_91, %c0_92, %c0_93], %153 {strides = array<i32>} : memref<3x2x160xf32, #tpu.memory_space<vmem>>, vector<1x2x160xf32>,
    %154 = arith.truncf %147 : vector<2x160xf32> to vector<2x160xbf16>
    %c2_94 = arith.constant 2 : index
    %c0_95 = arith.constant 0 : index
    %c0_96 = arith.constant 0 : index
    %155 = vector.load %arg7[%c2_94, %c0_95, %c0_96] : memref<3x160x2xbf16, #tpu.memory_space<vmem>>, vector<1x160x2xbf16>
    %156 = vector.shape_cast %155 : vector<1x160x2xbf16> to vector<160x2xbf16>
    %cst_97 = arith.constant dense<0.000000e+00> : vector<2x2xf32>
    %157 = tpu.matmul %154, %156, %cst_97 {dimension_numbers = #tpu.dot_dimension_numbers<[1], [0], [0], [1], [0, 0, 1, 1], [], []>} : vector<2x160xbf16>, vector<160x2xbf16>, vector<2x2xf32> -> vector<2x2xf32>
    %158 = arith.addf %106, %157 : vector<2x2xf32>
    %159 = tpu.iota {dimensions = array<i32: 1>} : vector<2x2xi32>
    %c1_i32 = arith.constant 1 : i32
    %160 = vector.broadcast %c1_i32 : i32 to vector<2x2xi32>
    %161 = arith.cmpi slt, %159, %160 : vector<2x2xi32>
    %cst_98 = arith.constant 0.000000e+00 : f32
    %162 = vector.broadcast %cst_98 : f32 to vector<2x2xf32>
    %163 = arith.maximumf %158, %162 : vector<2x2xf32>
    %164 = math.absf %158 : vector<2x2xf32>
    %cst_99 = arith.constant 0.000000e+00 : f32
    %165 = vector.broadcast %cst_99 : f32 to vector<2x2xf32>
    %166 = arith.subf %165, %164 : vector<2x2xf32>
    %167 = math.exp %166 : vector<2x2xf32>
    %168 = math.log1p %167 : vector<2x2xf32>
    %169 = arith.addf %163, %168 : vector<2x2xf32>
    %170 = arith.select %161, %158, %169 : vector<2x2xi1>, vector<2x2xf32>
    %c0_100 = arith.constant 0 : index
    %c0_101 = arith.constant 0 : index
    %171 = vector.load %arg9[%c0_100, %c0_101] : memref<2x2xf32, #tpu.memory_space<vmem>>, vector<2x2xf32>
    tpu.vector_store %arg9[%c0_100, %c0_101], %170 {strides = array<i32>} : memref<2x2xf32, #tpu.memory_space<vmem>>, vector<2x2xf32>,
    return
  }
}

</mosaic_0001>

<bundles_post_ra>
// kernel: deepar_forward.1
= control target key start
LH: loop header
LB: loop body
LE: loop exit
PB: predicated region body
PF: predicated region fallthrough
CT: control target
= control target key end

     0   :  { %17 = vsyncpa [#allocation3], 0  ;;  %s4921_s0 = inlined_call_operand.vmem [shape: f32[2,8], index: 0, kind: input, shape index: {}]   ;;  %s4922_s1 = inlined_call_operand.vmem [shape: f32[3,2,160], index: 1, kind: input, shape index: {}, may-alias: {1,10}]   ;;  %s4923_s2 = inlined_call_operand.vmem [shape: f32[3,2,160], index: 2, kind: input, shape index: {}, may-alias: {2,11}]   ;;  %s4924_s3 = inlined_call_operand.vmem [shape: bf16[8,640], index: 3, kind: input, shape index: {}]   ;;  %s4925_s4 = inlined_call_operand.hbm [shape: bf16[2,160,640], index: 4, kind: input, shape index: {}]   ;;  %s4926_s5 = inlined_call_operand.hbm [shape: bf16[3,160,640], index: 5, kind: input, shape index: {}]   ;;  %s4927_s6 = inlined_call_operand.vmem [shape: f32[3,1,640], index: 6, kind: input, shape index: {}]   ;;  %s4928_s7 = inlined_call_operand.vmem [shape: bf16[3,160,2], index: 7, kind: input, shape index: {}]   ;;  %s4929_s8 = inlined_call_operand.vmem [shape: f32[1,2], index: 8, kind: input, shape index: {}]   ;;  %s4930_s9 = inlined_call_operand.vmem [shape: f32[2,2], index: 9, kind: output, shape index: {0}]   ;;  %s4931_s10 = inlined_call_operand.vmem [shape: f32[3,2,160], index: 10, kind: output, shape index: {1}, may-alias: {1,10}]   ;;  %s4932_s11 = inlined_call_operand.vmem [shape: f32[3,2,160], index: 11, kind: output, shape index: {2}, may-alias: {2,11}]  }
   0x1   :  { %18 = vsyncpa [#allocation5], 0  ;;  %s4302_s17 = smov [#allocation2]  }
   0x2   :  { %s32_s18 = sshll.u32 %s4302_s17, 4  ;;  %s33_s18 = int_to_ptr.vmem [resolvable:$true] %s32_s18 }
   0x3   :  { %s4266_s19 = scalar_lea.vmem %s33_s18, 12800  ;;  %p4271_p1 = scmp.lt.s32.totalorder %s33_s18, %s33_s18 }
   0x4   :  { %p4267_p0 = scmp.ne.s32.totalorder %s33_s18, %s4266_s19  ;;  %p4272_p2 = scmp.lt.s32.totalorder %s4266_s19, %s4266_s19 }
   0x6   :  { %p4273_p3 = por %p4272_p2, %p4271_p1 }
   0x8   :  { %p4274_p4 = pnand %p4273_p3, %p4267_p0 }
   0xa   :  { %4277 = shalt.err (!%p4274_p4)
}
   0xb   :  { %s4303_s20 = smov 320   ;;  %s4304_s21 = smov 20  }
   0xc   :  { %38 = dma.hbm_to_vmem [thread:$0]  %s4925_s4, 12800, %s33_s18, [#allocation3], %s4303_s20, %s4303_s20, %s4304_s21  }
   0xd   :  { %s4305_s24 = smov [#allocation4]  }
   0xe   :  { %s44_s25 = sshll.u32 %s4305_s24, 4  ;;  %s45_s25 = int_to_ptr.vmem [resolvable:$true] %s44_s25 }
   0xf   :  { %s4286_s26 = scalar_lea.vmem %s45_s25, 19200  ;;  %p4291_p6 = scmp.lt.s32.totalorder %s45_s25, %s45_s25 }
  0x10   :  { %p4287_p5 = scmp.ne.s32.totalorder %s45_s25, %s4286_s26  ;;  %p4292_p7 = scmp.lt.s32.totalorder %s4286_s26, %s4286_s26 }
  0x12   :  { %p4293_p8 = por %p4292_p7, %p4291_p6 }
  0x14   :  { %p4294_p9 = pnand %p4293_p8, %p4287_p5 }
  0x16   :  { %4297 = shalt.err (!%p4294_p9)
}
  0x17   :  { %50 = dma.hbm_to_vmem [thread:$0]  %s4926_s5, 19200, %s45_s25, [#allocation5], %s4303_s20, %s4303_s20, %s4304_s21  }
  0x18   :  { %4298 = dma.done.wait [#allocation3], 12800  }
  0x19   :  { %4299 = vsyncadd [#allocation3], 4294954496 }
  0x1a   :  { %4300 = dma.done.wait [#allocation5], 19200  }
  0x1b   :  { %4301 = vsyncadd [#allocation5], 4294948096  ;;  %v3785_v0 = vld [vmem:[#allocation4 + $0x124] ss:$20 sps:$4 sm:$0xff]   ;;  %v3787_v1 = vld [vmem:[#allocation4 + $0x120] ss:$20 sps:$4 sm:$0xff]  }
  0x1c   :  { %449 = vmatprep.subr.bf16.mxu1 %v3785_v0  ;;  %v3788_v2 = vld [vmem:[#allocation4 + $0xfc] ss:$20 sps:$4 sm:$0xff]   ;;  %v3790_v3 = vld [vmem:[#allocation4 + $0xf8] ss:$20 sps:$4 sm:$0xff]   ;;  %v3791_v4 = vld [vmem:[#allocation4 + $0xd4] ss:$20 sps:$4 sm:$0xff]  }
  0x1d   :  { %450 = vmatpush1.bf16.msra.mxu1 %v3787_v1  ;;  %v3793_v5 = vld [vmem:[#allocation4 + $0x11c] ss:$20 sps:$4 sm:$0xff]   ;;  %v3796_v6 = vld [vmem:[#allocation4 + $0x118] ss:$20 sps:$4 sm:$0xff]   ;;  %v3799_v8 = vld [vmem:[#allocation4 + $0xf4] ss:$20 sps:$4 sm:$0xff]  }
  0x1e   :  { %451 = vmatprep.subr.bf16.mxu1 %v3788_v2  ;;  %408 = vmatprep.subr.bf16.mxu0 %v3793_v5  ;;  %v3795_v7 = vld [vmem:[#allocation4 + $0xd0] ss:$20 sps:$4 sm:$0xff]   ;;  %v3797_v10 = vld [vmem:[#allocation4 + $0xac] ss:$20 sps:$4 sm:$0xff]   ;;  %v3801_v12 = vld [vmem:[#allocation4 + $0xa8] ss:$20 sps:$4 sm:$0xff]  }
  0x1f   :  { %409 = vmatpush1.bf16.msra.mxu0 %v3796_v6  ;;  %v3802_v9 = vld [vmem:[#allocation4 + $0xf0] ss:$20 sps:$4 sm:$0xff]   ;;  %v3805_v11 = vld [vmem:[#allocation4 + $0xcc] ss:$20 sps:$4 sm:$0xff]   ;;  %v3808_v13 = vld [vmem:[#allocation4 + $0xc8] ss:$20 sps:$4 sm:$0xff]   ;;  %v687_v6 = vlaneseq }
  0x20   :  { %410 = vmatprep.subr.bf16.mxu0 %v3799_v8  ;;  %v3803_v14 = vld [vmem:[#allocation4 + $0x84] ss:$20 sps:$4 sm:$0xff]   ;;  %v3807_v16 = vld [vmem:[#allocation4 + $0x80] ss:$20 sps:$4 sm:$0xff]   ;;  %v3809_v17 = vld [vmem:[#allocation4 + $0x5c] ss:$20 sps:$4 sm:$0xff]  }
  0x21   :  { %452 = vmatpush1.bf16.msra.mxu1 %v3790_v3  ;;  %v3811_v15 = vld [vmem:[#allocation4 + $0xa4] ss:$20 sps:$4 sm:$0xff]   ;;  %v3814_v18 = vld [vmem:[#allocation4 + $0xa0] ss:$20 sps:$4 sm:$0xff]   ;;  %v3817_v19 = vld [vmem:[#allocation4 + $0x7c] ss:$20 sps:$4 sm:$0xff]  }
  0x22   :  { %453 = vmatprep.subr.bf16.mxu1 %v3791_v4  ;;  %v3813_v20 = vld [vmem:[#allocation4 + $0x58] ss:$20 sps:$4 sm:$0xff]   ;;  %v3815_v22 = vld [vmem:[#allocation4 + $0x34] ss:$20 sps:$4 sm:$0xff]   ;;  %v3819_v24 = vld [vmem:[#allocation4 + $0x30] ss:$20 sps:$4 sm:$0xff]  }
  0x23   :  { %411 = vmatpush1.bf16.msra.mxu0 %v3802_v9  ;;  %v3820_v21 = vld [vmem:[#allocation4 + $0x78] ss:$20 sps:$4 sm:$0xff]   ;;  %v3823_v23 = vld [vmem:[#allocation4 + $0x54] ss:$20 sps:$4 sm:$0xff]   ;;  %v3826_v26 = vld [vmem:[#allocation4 + $0x50] ss:$20 sps:$4 sm:$0xff]  }
  0x24   :  { %412 = vmatprep.subr.bf16.mxu0 %v3805_v11  ;;  %v3821_v25 = vld [vmem:[#allocation4 + $0xc] ss:$20 sps:$4 sm:$0xff]   ;;  %vm404_vm0 = vcmask 261120   ;;  %v3825_v30 = vld [vmem:[#allocation4 + $0x8] ss:$20 sps:$4 sm:$0xff]   ;;  %vm547_vm1 = vcmask 1043456  }
  0x25   :  { %454 = vmatpush1.bf16.msra.mxu1 %v3795_v7  ;;  %v3829_v27 = vld [vmem:[#allocation4 + $0x2c] ss:$20 sps:$4 sm:$0xff]   ;;  %v3827_v31 = vld [vmem:[#allocation4 + $0x174] ss:$20 sps:$4 sm:$0xff]   ;;  %v3835_v34 = vld [vmem:[#allocation4 + $0x4] ss:$20 sps:$4 sm:$0xff]  }
  0x26   :  { %455 = vmatprep.subr.bf16.mxu1 %v3797_v10  ;;  %v3401_v28 = vld.sshfl [vmem:[%s4922_s1] sm:$0x33 pattern:$0x76325410]  ;;  %v3832_v32 = vld [vmem:[#allocation4 + $0x28] ss:$20 sps:$4 sm:$0xff]  }
  0x27   :  { %413 = vmatpush1.bf16.msra.mxu0 %v3808_v13  ;;  %v79_v29 = vcombine.high %v3401_v28, %v3401_v28  ;;  %v3831_v35 = vld [vmem:[#allocation4 + $0x170] ss:$20 sps:$4 sm:$0xff]   ;;  %v3833_v36 = vld [vmem:[#allocation4 + $0x14c] ss:$20 sps:$4 sm:$0xff]   ;;  %v3837_v40 = vld [vmem:[#allocation4 + $0x148] ss:$20 sps:$4 sm:$0xff]   ;;  %v4387_v45 = vpack.c.bf16 %v3401_v28, %v3401_v28 }
  0x28   :  { %414 = vmatprep.subr.bf16.mxu0 %v3811_v15  ;;  %v3838_v37 = vld [vmem:[#allocation4] ss:$20 sps:$4 sm:$0xff]   ;;  %v68_v39 = vld [vmem:[%s4924_s3 + $0x8] sm:$0xff]  ;;  %v3844_v44 = vld [vmem:[#allocation4 + $0x144] ss:$20 sps:$4 sm:$0xff]   ;;  %s4306_s18 = smov 32  }
  0x29   :  { %456 = vmatpush1.bf16.msra.mxu1 %v3801_v12  ;;  %v83_v33 = vpack.c.bf16 %v79_v29, %v79_v29  ;;  %v3840_v38 = vld [vmem:[#allocation4 + $0x16c] ss:$20 sps:$4 sm:$0xff]   ;;  %v3843_v41 = vld [vmem:[#allocation4 + $0x168] ss:$20 sps:$4 sm:$0xff]   ;;  %v3458_v42 = vcombine.high %v68_v39, %v68_v39  ;;  %v3457_v43 = vcombine.low %v68_v39, %v68_v39  ;;  %v3859_v47 = vld [vmem:[%s4924_s3 + $0x10] ss:$0 sps:$4 sm:$0xff]  }
  0x2a   :  { %457 = vmatprep.subr.bf16.mxu1 %v3803_v14  ;;  %v3846_v46 = vld [vmem:[#allocation4 + $0x140] ss:$20 sps:$4 sm:$0xff]   ;;  %v3847_v51 = vld [vmem:[#allocation4 + $0x128] ss:$20 sps:$4 sm:$0xff]   ;;  %v4307_v53 = vmov 0   ;;  %vm543_vm2 = vcmask 64512  }
  0x2b   :  { %415 = vmatpush1.bf16.msra.mxu0 %v3814_v18  ;;  %3453 = vmatprep.mubr.msk.bf16.mxu1 %vm404_vm0, %v83_v33  ;;  %v3465_v48 = vld.sshfl [vmem:[%s4923_s2] sm:$0x33 pattern:$0x76325410]  ;;  %v555_v49 = vsel %vm547_vm1, %v3457_v43, 0  ;;  %v4308_v55 = vmov 0.0  }
  0x2c   :  { %416 = vmatprep.subr.bf16.mxu0 %v3817_v19  ;;  %3452 = vmatprep.mubr.msk.bf16.mxu0 %vm404_vm0, %v83_v33  ;;  %v65_v50 = vld [vmem:[%s4921_s0] sm:$0x3]  ;;  %v758_v52 = vcombine.high %v3465_v48, %v3465_v48  ;;  %v561_v56 = vsel %vm547_vm1, %v3859_v47, 0  ;;  %v3849_v58 = vld [vmem:[#allocation4 + $0xd8] ss:$20 sps:$4 sm:$0xff]   ;;  %vm4309_vm3 = vmmov 0  }
  0x2d   :  { %458 = vmatpush1.bf16.msra.mxu1 %v3807_v16  ;;  %759 = vrot.lane.b32.xlu1 %v3465_v48, %s4306_s18  ;;  %v3848_v54 = vld [vmem:[#allocation4 + $0x100] ss:$20 sps:$4 sm:$0xff]   ;;  %v66_v57 = vpack.c.bf16 %v65_v50, %v65_v50  ;;  %v3850_v59 = vld [vmem:[#allocation4 + $0xb0] ss:$20 sps:$4 sm:$0xff]   ;;  %v3851_v60 = vld [vmem:[#allocation4 + $0x88] ss:$20 sps:$4 sm:$0xff]  }
  0x2e   :  { %459 = vmatprep.subr.bf16.mxu1 %v3809_v17  ;;  %v3852_v61 = vld [vmem:[#allocation4 + $0x60] ss:$20 sps:$4 sm:$0xff]   ;;  %v3853_v62 = vld [vmem:[#allocation4 + $0x38] ss:$20 sps:$4 sm:$0xff]   ;;  %v3854_v63 = vld [vmem:[#allocation4 + $0x10] ss:$20 sps:$4 sm:$0xff]  }
  0x2f   :  { %417 = vmatpush1.bf16.msra.mxu0 %v3820_v21  ;;  %v67_v0 = vld [vmem:[%s4924_s3] sm:$0xff]  ;;  %v3855_v1 = vld [vmem:[#allocation4 + $0x178] ss:$20 sps:$4 sm:$0xff]   ;;  %v4429_v7 = vshrl.u32 %v687_v6, 7  ;;  %s4310_s21 = smov 64   ;;  %vm774_vm4 = vcmask 523264  }
  0x30   :  { %418 = vmatprep.subr.bf16.mxu0 %v3823_v23  ;;  %v3455_v2 = vcombine.low %v67_v0, %v67_v0  ;;  %v3856_v3 = vld [vmem:[#allocation4 + $0x150] ss:$20 sps:$4 sm:$0xff]   ;;  %v3456_v5 = vcombine.high %v67_v0, %v67_v0  ;;  %vm819_vm5 = vcmask 1041408   ;;  %vm820_vm6 = vcmask 257026  }
  0x31   :  { %460 = vmatpush1.bf16.msra.mxu1 %v3813_v20  ;;  %761 = vrot.lane.b32.xlu1 %v758_v52, %s4306_s18  ;;  %v4432_v10 = vsub.s32 2, %v4429_v7  ;;  %v4437_v12 = vld [vmem:[%s4927_s6] sm:$0x1f]  ;;  %v4440_v14 = vsub.s32 3, %v4429_v7  ;;  %vm4876_vm7 = vmor %vm820_vm6, %vm819_vm5  ;;  %vm836_vm8 = vcmask 785408   ;;  %vm3385_vm11 = vcmask 9216  }
  0x32   :  { %461 = vmatprep.subr.bf16.mxu1 %v3815_v22  ;;  %v549_v4 = vsel %vm547_vm1, %v3455_v2, 0 }
  0x33   :  { %419 = vmatpush1.bf16.msra.mxu0 %v3826_v26  ;;  %v698_v17 = vrot.slane %v4437_v12, %v4432_v10  ;;  %v702_v21 = vrot.slane %v4437_v12, %v4440_v14 }
  0x34   :  { %420 = vmatprep.subr.bf16.mxu0 %v3829_v27 }
  0x35   :  { %462 = vmatpush1.bf16.msra.mxu1 %v3819_v24 }
  0x36   :  { %463 = vmatprep.subr.bf16.mxu1 %v3821_v25 }
  0x37   :  { %421 = vmatpush1.bf16.msra.mxu0 %v3832_v32 }
  0x38   :  { %422 = vmatprep.subr.bf16.mxu0 %v3835_v34 }
  0x39   :  { %464 = vmatpush1.bf16.msra.mxu1 %v3825_v30 }
  0x3a   :  { %477 = vmatprep.subr.bf16.mxu1 %v3827_v31 }
  0x3b   :  { %423 = vmatpush1.bf16.msra.mxu0 %v3838_v37 }
  0x3c   :  { %436 = vmatprep.subr.bf16.mxu0 %v3840_v38 }
  0x3d   :  { %478 = vmatpush2.bf16.msra.mxu1 %v3831_v35 }
  0x3e   :  { %479 = vmatprep.subr.bf16.mxu1 %v3833_v36 }
  0x3f   :  { %437 = vmatpush2.bf16.msra.mxu0 %v3843_v41 }
  0x40   :  { %438 = vmatprep.subr.bf16.mxu0 %v3844_v44  ;;  %v4454_v44 = vsub.s32 1, %v4429_v7 }
  0x41   :  { %480 = vmatpush2.bf16.msra.mxu1 %v3837_v40 }
  0x42   :  { %3462 = vmatprep.subr.msk.bf16.mxu1 %vm547_vm1, %v3458_v42  ;;  %v694_v47 = vrot.slane %v4437_v12, %v4454_v44 }
  0x43   :  { %439 = vmatpush2.bf16.msra.mxu0 %v3846_v46 }
  0x44   :  { %482 = vmatmul.mubr.bf16.vlgmr.msra.gmra.mxu1 %v4387_v45  ;;  %490 = vmatprep.subr.bf16.mxu0 %v4307_v53 }
  0x45   :  { %619 = vmatpush1.bf16.msra.mxu1 %v555_v49  ;;  %636 = vmatprep.mubr.bf16.mxu1 %v4307_v53 }
  0x46   :  { %3768 = vmatprep.subr.bf16.mxu1 %v4308_v55  ;;  %441 = vmatmul.mubr.bf16.vlgmr.msra.gmra.mxu0 %v4387_v45 }
  0x47   :  { %491 = vmatpush1.bf16.msra.mxu0 %v3847_v51  ;;  %3454 = vmatprep.mubr.msk.bf16.mxu0 %vm404_vm0, %v83_v33 }
  0x48   :  { %492 = vmatprep.subr.bf16.mxu0 %v4307_v53 }
  0x4b   :  { %493 = vmatpush1.bf16.msra.mxu0 %v3848_v54 }
  0x4c   :  { %3463 = vmatmul.mubr.msk.bf16.vlgmr.msra.gmra.mxu1 %vm543_vm2, %v66_v57  ;;  %494 = vmatprep.subr.bf16.mxu0 %v4307_v53 }
  0x4d   :  { %3769 = vmatpush3.bf16.msra.mxu1 %v561_v56  ;;  %3770 = vmatprep.mubr.msk.bf16.mxu1 %vm4309_vm3, %v4308_v55 }
  0x4e   :  { %934 = vmatprep.subr.bf16.mxu1 %v4307_v53 }
  0x4f   :  { %495 = vmatpush1.bf16.msra.mxu0 %v3849_v58 }
  0x50   :  { %496 = vmatprep.subr.bf16.mxu0 %v4307_v53 }
  0x53   :  { %497 = vmatpush1.bf16.msra.mxu0 %v3850_v59 }
  0x54   :  { %3771 = vmatmul.mubr.msk.bf16.vlgmr.msra.gmra.mxu1 %vm543_vm2, %v66_v57  ;;  %498 = vmatprep.subr.bf16.mxu0 %v4307_v53 }
  0x57   :  { %499 = vmatpush1.bf16.msra.mxu0 %v3851_v60 }
  0x58   :  { %500 = vmatprep.subr.bf16.mxu0 %v4307_v53 }
  0x5b   :  { %501 = vmatpush1.bf16.msra.mxu0 %v3852_v61 }
  0x5c   :  { %502 = vmatprep.subr.bf16.mxu0 %v4307_v53 }
  0x5f   :  { %503 = vmatpush1.bf16.msra.mxu0 %v3853_v62 }
  0x60   :  { %504 = vmatprep.subr.bf16.mxu0 %v4307_v53 }
  0x63   :  { %505 = vmatpush1.bf16.msra.mxu0 %v3854_v63 }
  0x64   :  { %518 = vmatprep.subr.bf16.mxu0 %v4307_v53 }
  0x67   :  { %519 = vmatpush2.bf16.msra.mxu0 %v3855_v1 }
  0x68   :  { %520 = vmatprep.subr.bf16.mxu0 %v4307_v53 }
  0x6b   :  { %521 = vmatpush2.bf16.msra.mxu0 %v3856_v3 }
  0x6c   :  { %3460 = vmatprep.subr.msk.bf16.mxu0 %vm547_vm1, %v3456_v5 }
  0x6e   :  { %523 = vmatmul.mubr.bf16.vlgmr.msra.gmra.mxu0 %v4387_v45  ;;  %v4457_v45 = vsub.s32 0, %v4429_v7 }
  0x6f   :  { %578 = vmatpush1.bf16.msra.mxu0 %v549_v4  ;;  %595 = vmatprep.mubr.bf16.mxu0 %v4307_v53 }
  0x70   :  { %v690_v49 = vrot.slane %v4437_v12, %v4457_v45 }
  0x76   :  { %3461 = vmatmul.mubr.msk.bf16.vlgmr.msra.gmra.mxu0 %vm543_vm2, %v66_v57 }
 0x104   :  { %v483_v8 = vpop.f32.mrf.mxu1 }
 0x106   :  { %v485_v9 = vpop.f32.mrf.mxu1  ;;  %v442_v13 = vpop.f32.mrf.mxu0 }
 0x108   :  { %v487_v11 = vpop.f32.mrf.mxu1  ;;  %v444_v16 = vpop.f32.mrf.mxu0 }
 0x109   :  { %v760_v11 = vpop.permute.xlu1 %759 }
 0x10a   :  { %v488_v15 = vpop.f32.mrf.mxu1  ;;  %v446_v19 = vpop.f32.mrf.mxu0 }
 0x10c   :  { %v638_v18 = vpop.f32.mrf.mxu1  ;;  %v447_v23 = vpop.f32.mrf.mxu0 }
 0x10d   :  { %v639_v20 = vadd.f32 %v638_v18, %v483_v8 }
 0x10e   :  { %v640_v22 = vpop.f32.mrf.mxu1 }
 0x10f   :  { %v714_v24 = vadd.f32 %v698_v17, %v639_v20  ;;  %v641_v25 = vadd.f32 %v640_v22, %v485_v9 }
 0x110   :  { %v642_v26 = vpop.f32.mrf.mxu1 }
 0x111   :  { %4170 = vtanh.f32 %v714_v24  ;;  %v4446_v27 = vadd.f32 %v702_v21, %v641_v25  ;;  %v719_v4 = vsub.f32 0.0, %v714_v24  ;;  %v3862_v25 = vld [vmem:[#allocation4 + $0x2ac] ss:$20 sps:$4 sm:$0xff]   ;;  %v3860_v26 = vld [vmem:[#allocation4 + $0x2a8] ss:$20 sps:$4 sm:$0xff]  }
 0x112   :  { %v643_v28 = vpop.f32.mrf.mxu1  ;;  %1380 = vmatprep.subr.bf16.mxu0 %v3862_v25  ;;  %v3905_v25 = vld [vmem:[#allocation2 + $0xf8] ss:$20 sps:$4 sm:$0xff]  }
 0x113   :  { %4172 = vtanh.f32 %v4446_v27  ;;  %v724_v5 = vmul.f32 1.442695, %v719_v4  ;;  %1381 = vmatpush1.bf16.msra.mxu0 %v3860_v26  ;;  %v3863_v28 = vld [vmem:[#allocation4 + $0x280] ss:$20 sps:$4 sm:$0xff]  }
 0x114   :  { %v679_v29 = vpop.f32.mrf.mxu1  ;;  %v3936_v4 = vld [vmem:[%s4928_s7 + $0x40] sm:$0xff]  }
 0x116   :  { %v3772_v30 = vpop.f32.mrf.mxu1 }
 0x117   :  { %v3868_v30 = vld [vmem:[#allocation4 + $0x25c] ss:$20 sps:$4 sm:$0xff]  }
 0x118   :  { %v682_v31 = vpop.f32.mrf.mxu1 }
 0x119   :  { %v3866_v31 = vld [vmem:[#allocation4 + $0x258] ss:$20 sps:$4 sm:$0xff]  }
 0x11a   :  { %v3773_v32 = vpop.f32.mrf.mxu1 }
 0x11b   :  { %v3871_v32 = vld [vmem:[#allocation4 + $0x234] ss:$20 sps:$4 sm:$0xff]  }
 0x11e   :  { %v4171_v33 = vpop.eup %4170 }
 0x11f   :  { %770 = vrot.lane.b32.xlu0 %v4171_v33, %s4310_s21  ;;  %v3869_v33 = vld [vmem:[#allocation4 + $0x230] ss:$20 sps:$4 sm:$0xff]  }
 0x120   :  { %v4173_v34 = vpop.eup %4172 }
 0x123   :  { %772 = vrot.lane.b32.xlu0 %v4173_v34, %s4310_s21  ;;  %v3479_v34 = vld.sshfl [vmem:[%s4922_s1 + $0x4] sm:$0x33 pattern:$0x76325410] }
 0x12e   :  { %v524_v35 = vpop.f32.mrf.mxu0 }
 0x12f   :  { %v4451_v36 = vadd.f32 %v679_v29, %v524_v35  ;;  %v3865_v29 = vld [vmem:[#allocation4 + $0x284] ss:$20 sps:$4 sm:$0xff]  }
 0x130   :  { %v526_v37 = vpop.f32.mrf.mxu0  ;;  %1382 = vmatprep.subr.bf16.mxu0 %v3865_v29  ;;  %v737_v29 = vsub.f32 0.0, %v4446_v27  ;;  %v3927_v27 = vld [vmem:[#allocation2 + $0x34] ss:$20 sps:$4 sm:$0xff]  }
 0x131   :  { %1383 = vmatpush1.bf16.msra.mxu0 %v3863_v28  ;;  %v3874_v37 = vld [vmem:[#allocation4 + $0x20c] ss:$20 sps:$4 sm:$0xff]   ;;  %v3911_v28 = vld [vmem:[#allocation2 + $0xd4] ss:$20 sps:$4 sm:$0xff]  }
 0x132   :  { %v527_v38 = vpop.f32.mrf.mxu0  ;;  %1384 = vmatprep.subr.bf16.mxu0 %v3868_v30  ;;  %v3909_v30 = vld [vmem:[#allocation2 + $0xd0] ss:$20 sps:$4 sm:$0xff]  }
 0x133   :  { %v1051_v38 = vcombine.high %v3479_v34, %v3479_v34 }
 0x134   :  { %v528_v39 = vpop.f32.mrf.mxu0 }
 0x135   :  { %1385 = vmatpush1.bf16.msra.mxu0 %v3866_v31 }
 0x136   :  { %v597_v40 = vpop.f32.mrf.mxu0  ;;  %1386 = vmatprep.subr.bf16.mxu0 %v3871_v32  ;;  %v3915_v32 = vld [vmem:[#allocation2 + $0xac] ss:$20 sps:$4 sm:$0xff]  }
 0x137   :  { %v598_v48 = vadd.f32 %v597_v40, %v442_v13  ;;  %v762_v13 = vpop.permute.xlu1 %761  ;;  %v4481_v40 = vpack.c.bf16 %v1051_v38, %v1051_v38  ;;  %v3921_v38 = vld [vmem:[#allocation2 + $0x58] ss:$20 sps:$4 sm:$0xff]  }
 0x138   :  { %v599_v41 = vpop.f32.mrf.mxu0 }
 0x139   :  { %v600_v46 = vadd.f32 %v599_v41, %v444_v16  ;;  %v712_v51 = vadd.f32 %v690_v49, %v598_v48  ;;  %v763_v16 = vsel %vm404_vm0, %v760_v11, %v762_v13  ;;  %1387 = vmatpush1.bf16.msra.mxu0 %v3869_v33  ;;  %v3872_v41 = vld [vmem:[#allocation4 + $0x208] ss:$20 sps:$4 sm:$0xff]   ;;  %3530 = vmatprep.mubr.msk.bf16.mxu0 %vm404_vm0, %v4481_v40  ;;  %v3897_v13 = vld [vmem:[#allocation4 + $0x1a0] ss:$20 sps:$4 sm:$0xff]   ;;  %v739_v33 = vmul.f32 1.442695, %v737_v29 }
 0x13a   :  { %v601_v42 = vpop.f32.mrf.mxu0  ;;  %1388 = vmatprep.subr.bf16.mxu0 %v3874_v37  ;;  %v3880_v48 = vld [vmem:[#allocation4 + $0x1bc] ss:$20 sps:$4 sm:$0xff]   ;;  %v3908_v49 = vld [vmem:[%s4928_s7 + $0x28] sm:$0xff]   ;;  %v3917_v37 = vld [vmem:[#allocation2 + $0x80] ss:$20 sps:$4 sm:$0xff]  }
 0x13b   :  { %v713_v50 = vadd.f32 %v694_v47, %v600_v46  ;;  %v717_v54 = vsub.f32 0.0, %v712_v51  ;;  %v3900_v42 = vld [vmem:[%s4928_s7 + $0x38] sm:$0xff]   ;;  %v3904_v46 = vld [vmem:[%s4928_s7 + $0x30] sm:$0xff]  }
 0x13c   :  { %v602_v43 = vpop.f32.mrf.mxu0  ;;  %935 = vmatpush1.bf16.msra.mxu1 %v3900_v42  ;;  %v3875_v47 = vld [vmem:[#allocation4 + $0x1e0] ss:$20 sps:$4 sm:$0xff]   ;;  %v3955_v29 = vld [vmem:[#allocation4 + $0x1e8] ss:$20 sps:$4 sm:$0xff]  }
 0x13d   :  { %v718_v52 = vsub.f32 0.0, %v713_v50  ;;  %v720_v56 = vmul.f32 1.442695, %v717_v54  ;;  %v3877_v43 = vld [vmem:[#allocation4 + $0x1e4] ss:$20 sps:$4 sm:$0xff]   ;;  %936 = vmatprep.subr.bf16.mxu1 %v4307_v53  ;;  %1389 = vmatpush1.bf16.msra.mxu0 %v3872_v41 }
 0x13e   :  { %1390 = vmatprep.subr.bf16.mxu0 %v3877_v43  ;;  %v3878_v50 = vld [vmem:[#allocation4 + $0x1b8] ss:$20 sps:$4 sm:$0xff]   ;;  %v3883_v51 = vld [vmem:[#allocation4 + $0x194] ss:$20 sps:$4 sm:$0xff]   ;;  %v3881_v54 = vld [vmem:[#allocation4 + $0x190] ss:$20 sps:$4 sm:$0xff]  }
 0x13f   :  { %v722_v55 = vmul.f32 1.442695, %v718_v52  ;;  %v3912_v52 = vld [vmem:[%s4928_s7 + $0x20] sm:$0xff]   ;;  %v3929_v43 = vld [vmem:[#allocation2 + $0x8] ss:$20 sps:$4 sm:$0xff]  }
 0x140   :  { %937 = vmatpush1.bf16.msra.mxu1 %v3904_v46  ;;  %v3931_v41 = vld [vmem:[#allocation2 + $0xc] ss:$20 sps:$4 sm:$0xff]   ;;  %v3935_v46 = vld [vmem:[#allocation2 + $0x174] ss:$20 sps:$4 sm:$0xff]  }
 0x141   :  { %4174 = vpow2.f32 %v722_v55  ;;  %938 = vmatprep.subr.bf16.mxu1 %v4307_v53  ;;  %1391 = vmatpush1.bf16.msra.mxu0 %v3875_v47  ;;  %v3886_v55 = vld [vmem:[#allocation4 + $0x2fc] ss:$20 sps:$4 sm:$0xff]  }
 0x142   :  { %4176 = vpow2.f32 %v720_v56  ;;  %1392 = vmatprep.subr.bf16.mxu0 %v3880_v48  ;;  %v3916_v56 = vld [vmem:[%s4928_s7 + $0x18] sm:$0xff]  }
 0x144   :  { %939 = vmatpush1.bf16.msra.mxu1 %v3908_v49  ;;  %v3933_v49 = vld [vmem:[#allocation2 + $0x170] ss:$20 sps:$4 sm:$0xff]  }
 0x145   :  { %940 = vmatprep.subr.bf16.mxu1 %v4307_v53  ;;  %1393 = vmatpush1.bf16.msra.mxu0 %v3878_v50 }
 0x146   :  { %1394 = vmatprep.subr.bf16.mxu0 %v3883_v51  ;;  %v3939_v51 = vld [vmem:[#allocation2 + $0x14c] ss:$20 sps:$4 sm:$0xff]  }
 0x148   :  { %941 = vmatpush1.bf16.msra.mxu1 %v3912_v52  ;;  %v3937_v52 = vld [vmem:[#allocation2 + $0x148] ss:$20 sps:$4 sm:$0xff]  }
 0x149   :  { %942 = vmatprep.subr.bf16.mxu1 %v4307_v53  ;;  %1395 = vmatpush1.bf16.msra.mxu0 %v3881_v54  ;;  %v3942_v54 = vld [vmem:[#allocation4 + $0x2b4] ss:$20 sps:$4 sm:$0xff]  }
 0x14a   :  { %1408 = vmatprep.subr.bf16.mxu0 %v3886_v55 }
 0x14c   :  { %943 = vmatpush1.bf16.msra.mxu1 %v3916_v56 }
 0x14d   :  { %944 = vmatprep.subr.bf16.mxu1 %v4307_v53 }
 0x14e   :  { %v4175_v57 = vpop.eup %4174 }
 0x14f   :  { %v4177_v58 = vpop.eup %4176  ;;  %v727_v59 = vadd.f32 1.0, %v4175_v57  ;;  %v3884_v57 = vld [vmem:[#allocation4 + $0x2f8] ss:$20 sps:$4 sm:$0xff]  }
 0x150   :  { %v726_v60 = vadd.f32 1.0, %v4177_v58  ;;  %v3889_v58 = vld [vmem:[#allocation4 + $0x2d4] ss:$20 sps:$4 sm:$0xff]   ;;  %1409 = vmatpush2.bf16.msra.mxu0 %v3884_v57 }
 0x151   :  { %4178 = vrcp.f32 %v727_v59  ;;  %v3920_v59 = vld [vmem:[%s4928_s7 + $0x10] sm:$0xff]   ;;  %1410 = vmatprep.subr.bf16.mxu0 %v3889_v58 }
 0x152   :  { %4180 = vrcp.f32 %v726_v60  ;;  %v3887_v60 = vld [vmem:[#allocation4 + $0x2d0] ss:$20 sps:$4 sm:$0xff]   ;;  %945 = vmatpush1.bf16.msra.mxu1 %v3920_v59 }
 0x153   :  { %4182 = vpow2.f32 %v724_v5  ;;  %946 = vmatprep.subr.bf16.mxu1 %v4307_v53  ;;  %v3893_v5 = vld [vmem:[#allocation4 + $0x240] ss:$20 sps:$4 sm:$0xff]  }
 0x154   :  { %1411 = vmatpush2.bf16.msra.mxu0 %v3887_v60 }
 0x155   :  { %1462 = vmatprep.subr.bf16.mxu0 %v4307_v53 }
 0x15e   :  { %v4179_v62 = vpop.eup %4178 }
 0x15f   :  { %v4181_v0 = vpop.eup %4180  ;;  %v766_v18 = vmul.f32 %v4179_v62, %v760_v11  ;;  %v3896_v11 = vld [vmem:[#allocation4 + $0x1c8] ss:$20 sps:$4 sm:$0xff]  }
 0x160   :  { %v4183_v8 = vpop.eup %4182 }
 0x161   :  { %v728_v9 = vadd.f32 1.0, %v4183_v8  ;;  %v3894_v8 = vld [vmem:[#allocation4 + $0x218] ss:$20 sps:$4 sm:$0xff]  }
 0x163   :  { %4184 = vrcp.f32 %v728_v9  ;;  %v3895_v9 = vld [vmem:[#allocation4 + $0x1f0] ss:$20 sps:$4 sm:$0xff]  }
 0x170   :  { %v4185_v15 = vpop.eup %4184 }
 0x171   :  { %v767_v19 = vmul.f32 %v4185_v15, %v763_v16  ;;  %v3898_v15 = vld [vmem:[#allocation4 + $0x308] ss:$20 sps:$4 sm:$0xff]   ;;  %v3899_v16 = vld [vmem:[#allocation4 + $0x2e0] ss:$20 sps:$4 sm:$0xff]  }
 0x191   :  { %v771_v61 = vpop.permute.xlu0 %770 }
 0x195   :  { %v773_v63 = vpop.permute.xlu0 %772 }
 0x196   :  { %v775_v1 = vsel %vm774_vm4, %v771_v61, %v773_v63  ;;  %v779_v2 = vmul.f32 %v4179_v62, %v773_v63  ;;  %v3924_v61 = vld [vmem:[%s4928_s7 + $0x8] sm:$0xff]   ;;  %v4511_v62 = vpack.c.bf16 %v3479_v34, %v3479_v34 }
 0x197   :  { %v778_v3 = vmul.f32 %v4181_v0, %v775_v1  ;;  %v3890_v63 = vld [vmem:[#allocation4 + $0x2b8] ss:$20 sps:$4 sm:$0xff]   ;;  %947 = vmatpush1.bf16.msra.mxu1 %v3924_v61  ;;  %v3928_v0 = vld [vmem:[%s4928_s7] sm:$0xff]  }
 0x198   :  { %784 = vrot.lane.b32.xlu1 %v779_v2, %s4306_s18  ;;  %1413 = vmatmul.mubr.bf16.vlgmr.msra.gmra.mxu0 %v4511_v62  ;;  %v3891_v1 = vld [vmem:[#allocation4 + $0x290] ss:$20 sps:$4 sm:$0xff]   ;;  %v3932_v2 = vld [vmem:[%s4928_s7 + $0x48] sm:$0xff]  }
 0x199   :  { %782 = vrot.lane.b32.xlu0 %v778_v3, %s4306_s18  ;;  %948 = vmatprep.subr.bf16.mxu1 %v4307_v53  ;;  %v3892_v3 = vld [vmem:[#allocation4 + $0x268] ss:$20 sps:$4 sm:$0xff]  }
 0x19a   :  { %1463 = vmatpush1.bf16.msra.mxu0 %v3890_v63  ;;  %3532 = vmatprep.mubr.msk.bf16.mxu0 %vm404_vm0, %v4481_v40 }
 0x19b   :  { %1464 = vmatprep.subr.bf16.mxu0 %v4307_v53  ;;  %949 = vmatpush1.bf16.msra.mxu1 %v3928_v0 }
 0x19c   :  { %962 = vmatprep.subr.bf16.mxu1 %v4307_v53 }
 0x19e   :  { %1465 = vmatpush1.bf16.msra.mxu0 %v3891_v1 }
 0x19f   :  { %1466 = vmatprep.subr.bf16.mxu0 %v4307_v53  ;;  %963 = vmatpush2.bf16.msra.mxu1 %v3932_v2 }
 0x1a0   :  { %964 = vmatprep.subr.bf16.mxu1 %v4307_v53 }
 0x1a2   :  { %1467 = vmatpush1.bf16.msra.mxu0 %v3892_v3 }
 0x1a3   :  { %1468 = vmatprep.subr.bf16.mxu0 %v4307_v53  ;;  %965 = vmatpush2.bf16.msra.mxu1 %v3936_v4 }
 0x1a4   :  { %1421 = vmatprep.subr.bf16.mxu1 %v3942_v54  ;;  %v3990_v54 = vld [vmem:[#allocation2 + $0x2c] ss:$20 sps:$4 sm:$0xff]  }
 0x1a6   :  { %1469 = vmatpush1.bf16.msra.mxu0 %v3893_v5 }
 0x1a7   :  { %1470 = vmatprep.subr.bf16.mxu0 %v4307_v53 }
 0x1aa   :  { %1471 = vmatpush1.bf16.msra.mxu0 %v3894_v8  ;;  %v3940_v8 = vld [vmem:[#allocation4 + $0x2b0] ss:$20 sps:$4 sm:$0xff]  }
 0x1ab   :  { %1472 = vmatprep.subr.bf16.mxu0 %v4307_v53 }
 0x1ae   :  { %1473 = vmatpush1.bf16.msra.mxu0 %v3895_v9 }
 0x1af   :  { %1474 = vmatprep.subr.bf16.mxu0 %v4307_v53 }
 0x1b2   :  { %1475 = vmatpush1.bf16.msra.mxu0 %v3896_v11  ;;  %v3945_v11 = vld [vmem:[#allocation4 + $0x28c] ss:$20 sps:$4 sm:$0xff]  }
 0x1b3   :  { %1476 = vmatprep.subr.bf16.mxu0 %v4307_v53 }
 0x1b6   :  { %1477 = vmatpush1.bf16.msra.mxu0 %v3897_v13 }
 0x1b7   :  { %1490 = vmatprep.subr.bf16.mxu0 %v4307_v53 }
 0x1ba   :  { %1491 = vmatpush2.bf16.msra.mxu0 %v3898_v15 }
 0x1bb   :  { %1492 = vmatprep.subr.bf16.mxu0 %v4307_v53 }
 0x1be   :  { %1493 = vmatpush2.bf16.msra.mxu0 %v3899_v16  ;;  %v3943_v16 = vld [vmem:[#allocation4 + $0x288] ss:$20 sps:$4 sm:$0xff]  }
 0x1c1   :  { %1495 = vmatmul.mubr.bf16.vlgmr.msra.gmra.mxu0 %v4511_v62 }
 0x20a   :  { %v785_v17 = vpop.permute.xlu1 %784 }
 0x20b   :  { %v783_v20 = vpop.permute.xlu0 %782 }
 0x20c   :  { %v786_v21 = vsel %vm404_vm0, %v783_v20, %v785_v17  ;;  %v4468_v22 = vadd.f32 %v783_v20, %v766_v18  ;;  %v4539_v17 = vsub.s32 4, %v4429_v7  ;;  %v3903_v18 = vld [vmem:[#allocation2 + $0x124] ss:$20 sps:$4 sm:$0xff]  }
 0x20d   :  { %v4470_v23 = vadd.f32 %v786_v21, %v767_v19  ;;  %v3901_v19 = vld [vmem:[#allocation2 + $0x120] ss:$20 sps:$4 sm:$0xff]   ;;  %1803 = vmatprep.subr.bf16.mxu0 %v3903_v18  ;;  %v3907_v21 = vld [vmem:[#allocation2 + $0xfc] ss:$20 sps:$4 sm:$0xff]   ;;  %v3948_v18 = vld [vmem:[#allocation4 + $0x264] ss:$20 sps:$4 sm:$0xff]  }
 0x20e   :  { %4186 = vtanh.f32 %v4468_v22  ;;  %v706_v20 = vrot.slane %v4437_v12, %v4539_v17  ;;  %1804 = vmatpush1.bf16.msra.mxu0 %v3901_v19  ;;  %v3913_v12 = vld [vmem:[#allocation2 + $0xa8] ss:$20 sps:$4 sm:$0xff]   ;;  %v3946_v19 = vld [vmem:[#allocation4 + $0x260] ss:$20 sps:$4 sm:$0xff]  }
 0x20f   :  { %4188 = vtanh.f32 %v4470_v23  ;;  %v825_v24 = vcombine.low %v4468_v22, %v4470_v23  ;;  %1805 = vmatprep.subr.bf16.mxu0 %v3907_v21  ;;  %v3949_v21 = vld [vmem:[#allocation4 + $0x238] ss:$20 sps:$4 sm:$0xff]  }
 0x210   :  { %v716_v26 = vadd.f32 %v706_v20, %v4451_v36  ;;  %4190 = vpow2.f32 %v739_v33  ;;  %v3923_v36 = vld [vmem:[#allocation2 + $0x5c] ss:$20 sps:$4 sm:$0xff]   ;;  %v3961_v33 = vld [vmem:[#allocation4 + $0x198] ss:$20 sps:$4 sm:$0xff]  }
 0x211   :  { %v3951_v20 = vld [vmem:[#allocation4 + $0x23c] ss:$20 sps:$4 sm:$0xff]  }
 0x212   :  { %1806 = vmatpush1.bf16.msra.mxu0 %v3905_v25  ;;  %v738_v31 = vsub.f32 0.0, %v716_v26  ;;  %v3954_v25 = vld [vmem:[#allocation4 + $0x214] ss:$20 sps:$4 sm:$0xff]   ;;  %v3952_v26 = vld [vmem:[#allocation4 + $0x210] ss:$20 sps:$4 sm:$0xff]  }
 0x213   :  { %1807 = vmatprep.subr.bf16.mxu0 %v3911_v28  ;;  %v3957_v28 = vld [vmem:[#allocation4 + $0x1ec] ss:$20 sps:$4 sm:$0xff]  }
 0x214   :  { %v741_v34 = vmul.f32 1.442695, %v738_v31  ;;  %v3963_v31 = vld [vmem:[#allocation4 + $0x19c] ss:$20 sps:$4 sm:$0xff]  }
 0x216   :  { %1808 = vmatpush1.bf16.msra.mxu0 %v3909_v30  ;;  %4192 = vpow2.f32 %v741_v34  ;;  %v3960_v30 = vld [vmem:[#allocation4 + $0x1c4] ss:$20 sps:$4 sm:$0xff]  }
 0x217   :  { %1809 = vmatprep.subr.bf16.mxu0 %v3915_v32 }
 0x21a   :  { %1810 = vmatpush1.bf16.msra.mxu0 %v3913_v12  ;;  %v3966_v12 = vld [vmem:[#allocation4 + $0x304] ss:$20 sps:$4 sm:$0xff]  }
 0x21b   :  { %v4187_v35 = vpop.eup %4186 }
 0x21c   :  { %v4189_v39 = vpop.eup %4188  ;;  %795 = vrot.lane.b32.xlu0 %v4187_v35, %s4310_s21  ;;  %v3919_v35 = vld [vmem:[#allocation2 + $0x84] ss:$20 sps:$4 sm:$0xff]  }
 0x21d   :  { %797 = vrot.lane.b32.xlu1 %v4189_v39, %s4310_s21  ;;  %1811 = vmatprep.subr.bf16.mxu0 %v3919_v35  ;;  %v3925_v39 = vld [vmem:[#allocation2 + $0x30] ss:$20 sps:$4 sm:$0xff]   ;;  %v4191_v42 = vpop.eup %4190 }
 0x21e   :  { %1812 = vmatpush1.bf16.msra.mxu0 %v3917_v37  ;;  %v743_v48 = vadd.f32 1.0, %v4191_v42  ;;  %v3964_v37 = vld [vmem:[#allocation4 + $0x300] ss:$20 sps:$4 sm:$0xff]  }
 0x21f   :  { %1813 = vmatprep.subr.bf16.mxu0 %v3923_v36  ;;  %v3969_v36 = vld [vmem:[#allocation4 + $0x2dc] ss:$20 sps:$4 sm:$0xff]   ;;  %v3975_v42 = vld [vmem:[#allocation2 + $0xf4] ss:$20 sps:$4 sm:$0xff]  }
 0x220   :  { %4194 = vrcp.f32 %v743_v48  ;;  %v3981_v48 = vld [vmem:[#allocation2 + $0xa4] ss:$20 sps:$4 sm:$0xff]  }
 0x222   :  { %1814 = vmatpush1.bf16.msra.mxu0 %v3921_v38 }
 0x223   :  { %1815 = vmatprep.subr.bf16.mxu0 %v3927_v27  ;;  %v4193_v47 = vpop.eup %4192  ;;  %v3967_v27 = vld [vmem:[#allocation4 + $0x2d8] ss:$20 sps:$4 sm:$0xff]  }
 0x224   :  { %v744_v50 = vadd.f32 1.0, %v4193_v47  ;;  %v3976_v47 = vld [vmem:[#allocation2 + $0xc8] ss:$20 sps:$4 sm:$0xff]  }
 0x226   :  { %1816 = vmatpush1.bf16.msra.mxu0 %v3925_v39  ;;  %4196 = vrcp.f32 %v744_v50  ;;  %v3972_v39 = vld [vmem:[#allocation2 + $0x11c] ss:$20 sps:$4 sm:$0xff]  }
 0x227   :  { %1817 = vmatprep.subr.bf16.mxu0 %v3931_v41  ;;  %v3970_v41 = vld [vmem:[#allocation2 + $0x118] ss:$20 sps:$4 sm:$0xff]   ;;  %v3984_v50 = vld [vmem:[#allocation2 + $0x7c] ss:$20 sps:$4 sm:$0xff]  }
 0x22a   :  { %1818 = vmatpush1.bf16.msra.mxu0 %v3929_v43  ;;  %v3973_v43 = vld [vmem:[#allocation2 + $0xf0] ss:$20 sps:$4 sm:$0xff]  }
 0x22b   :  { %1831 = vmatprep.subr.bf16.mxu0 %v3935_v46  ;;  %v3978_v46 = vld [vmem:[#allocation2 + $0xcc] ss:$20 sps:$4 sm:$0xff]  }
 0x22d   :  { %v4195_v55 = vpop.eup %4194 }
 0x22e   :  { %1832 = vmatpush2.bf16.msra.mxu0 %v3933_v49  ;;  %v3979_v49 = vld [vmem:[#allocation2 + $0xa0] ss:$20 sps:$4 sm:$0xff]  }
 0x22f   :  { %1833 = vmatprep.subr.bf16.mxu0 %v3939_v51  ;;  %v3982_v51 = vld [vmem:[#allocation2 + $0x78] ss:$20 sps:$4 sm:$0xff]  }
 0x232   :  { %1834 = vmatpush2.bf16.msra.mxu0 %v3937_v52  ;;  %v3987_v52 = vld [vmem:[#allocation2 + $0x54] ss:$20 sps:$4 sm:$0xff]  }
 0x233   :  { %2132 = vmatprep.subr.bf16.mxu0 %v4307_v53  ;;  %v4197_v59 = vpop.eup %4196 }
 0x258   :  { %v4561_v2 = vpop.f32.mrf.mxu0 }
 0x25a   :  { %v4563_v3 = vpop.f32.mrf.mxu0 }
 0x25c   :  { %v1418_v4 = vpop.f32.mrf.mxu0 }
 0x25d   :  { %v4000_v4 = vld [vmem:[#allocation2 + $0x128] ss:$20 sps:$4 sm:$0xff]  }
 0x25e   :  { %v1419_v13 = vpop.f32.mrf.mxu0 }
 0x25f   :  { %v4004_v13 = vld [vmem:[#allocation2 + $0x88] ss:$20 sps:$4 sm:$0xff]  }
 0x281   :  { %v4579_v32 = vpop.f32.mrf.mxu0 }
 0x283   :  { %v1498_v34 = vpop.f32.mrf.mxu0 }
 0x285   :  { %v1499_v35 = vpop.f32.mrf.mxu0 }
 0x287   :  { %v1500_v38 = vpop.f32.mrf.mxu0 }
 0x28e   :  { %v796_v56 = vpop.permute.xlu0 %795 }
 0x28f   :  { %v4548_v57 = vmul.f32 %v4195_v55, %v796_v56  ;;  %v798_v58 = vpop.permute.xlu1 %797  ;;  %v3988_v55 = vld [vmem:[#allocation2 + $0x28] ss:$20 sps:$4 sm:$0xff]  }
 0x290   :  { %v799_v60 = vsel %vm774_vm4, %v796_v56, %v798_v58  ;;  %v3993_v56 = vld [vmem:[#allocation2 + $0x4] ss:$20 sps:$4 sm:$0xff]   ;;  %v3991_v58 = vld [vmem:[#allocation2] ss:$20 sps:$4 sm:$0xff]  }
 0x291   :  { %v840_v61 = vpack.c.bf16 %v4548_v57, %v4548_v57  ;;  %v4553_v63 = vmul.f32 %v4197_v59, %v799_v60  ;;  %v3996_v59 = vld [vmem:[#allocation2 + $0x16c] ss:$20 sps:$4 sm:$0xff]   ;;  %v3994_v60 = vld [vmem:[#allocation2 + $0x168] ss:$20 sps:$4 sm:$0xff]  }
 0x293   :  { %v806_v0 = vcombine.low %v4548_v57, %v4553_v63  ;;  %864 = vrot.lane.b32.xlu0 %v840_v61, %s4306_s18  ;;  %v841_v1 = vpack.c.bf16 %v4553_v63, %v4553_v63  ;;  %v3999_v61 = vld [vmem:[#allocation2 + $0x144] ss:$20 sps:$4 sm:$0xff]  }
 0x295   :  { %866 = vrot.lane.b32.xlu1 %v841_v1, %s4306_s18  ;;  %v3997_v1 = vld [vmem:[#allocation2 + $0x140] ss:$20 sps:$4 sm:$0xff]  }
 0x305   :  { %v865_v5 = vpop.permute.xlu0 %864 }
 0x307   :  { %v4565_v9 = vpop.permute.xlu1 %866 }
 0x308   :  { %3476 = vmatprep.mubr.msk.bf16.mxu1 %vm404_vm0, %v4565_v9  ;;  %3584 = vmatprep.mubr.msk.bf16.mxu0 %vm404_vm0, %v4565_v9  ;;  %v4573_v15 = vsel %vm404_vm0, %v865_v5, %v4565_v9  ;;  %v4001_v5 = vld [vmem:[#allocation2 + $0x100] ss:$20 sps:$4 sm:$0xff]  }
 0x309   :  { %967 = vmatmul.mubr.bf16.vlgmr.msra.gmra.mxu1 %v4573_v15  ;;  %1836 = vmatmul.mubr.bf16.vlgmr.msra.gmra.mxu0 %v4573_v15 }
 0x30a   :  { %1422 = vmatpush1.bf16.msra.mxu1 %v3940_v8  ;;  %3531 = vmatprep.mubr.msk.bf16.mxu1 %vm404_vm0, %v4481_v40  ;;  %v3958_v40 = vld [vmem:[#allocation4 + $0x1c0] ss:$20 sps:$4 sm:$0xff]   ;;  %v4002_v8 = vld [vmem:[#allocation2 + $0xd8] ss:$20 sps:$4 sm:$0xff]  }
 0x30b   :  { %1423 = vmatprep.subr.bf16.mxu1 %v3945_v11  ;;  %v4003_v11 = vld [vmem:[#allocation2 + $0xb0] ss:$20 sps:$4 sm:$0xff]  }
 0x30e   :  { %1424 = vmatpush1.bf16.msra.mxu1 %v3943_v16  ;;  %v4005_v16 = vld [vmem:[#allocation2 + $0x60] ss:$20 sps:$4 sm:$0xff]  }
 0x30f   :  { %1425 = vmatprep.subr.bf16.mxu1 %v3948_v18  ;;  %v4007_v18 = vld [vmem:[#allocation2 + $0x10] ss:$20 sps:$4 sm:$0xff]  }
 0x312   :  { %1426 = vmatpush1.bf16.msra.mxu1 %v3946_v19  ;;  %v4008_v19 = vld [vmem:[#allocation2 + $0x178] ss:$20 sps:$4 sm:$0xff]  }
 0x313   :  { %1427 = vmatprep.subr.bf16.mxu1 %v3951_v20  ;;  %v4009_v20 = vld [vmem:[#allocation2 + $0x150] ss:$20 sps:$4 sm:$0xff]  }
 0x316   :  { %1428 = vmatpush1.bf16.msra.mxu1 %v3949_v21 }
 0x317   :  { %1429 = vmatprep.subr.bf16.mxu1 %v3954_v25 }
 0x31a   :  { %1430 = vmatpush1.bf16.msra.mxu1 %v3952_v26 }
 0x31b   :  { %1431 = vmatprep.subr.bf16.mxu1 %v3957_v28 }
 0x31e   :  { %1432 = vmatpush1.bf16.msra.mxu1 %v3955_v29 }
 0x31f   :  { %1433 = vmatprep.subr.bf16.mxu1 %v3960_v30 }
 0x322   :  { %1434 = vmatpush1.bf16.msra.mxu1 %v3958_v40 }
 0x323   :  { %1435 = vmatprep.subr.bf16.mxu1 %v3963_v31 }
 0x326   :  { %1436 = vmatpush1.bf16.msra.mxu1 %v3961_v33  ;;  %v4603_v33 = vld [vmem:[%s4927_s6 + $0x5] sm:$0x1f] }
 0x327   :  { %1449 = vmatprep.subr.bf16.mxu1 %v3966_v12  ;;  %v1898_v12 = vrot.slane %v4603_v33, %v4432_v10 }
 0x32a   :  { %1450 = vmatpush2.bf16.msra.mxu1 %v3964_v37 }
 0x32b   :  { %1451 = vmatprep.subr.bf16.mxu1 %v3969_v36 }
 0x32e   :  { %1452 = vmatpush2.bf16.msra.mxu1 %v3967_v27 }
 0x32f   :  { %1762 = vmatprep.subr.bf16.mxu1 %v3972_v39 }
 0x331   :  { %1454 = vmatmul.mubr.bf16.vlgmr.msra.gmra.mxu1 %v4511_v62  ;;  %v3985_v62 = vld [vmem:[#allocation2 + $0x50] ss:$20 sps:$4 sm:$0xff]  }
 0x332   :  { %1763 = vmatpush1.bf16.msra.mxu1 %v3970_v41  ;;  %3583 = vmatprep.mubr.msk.bf16.mxu1 %vm404_vm0, %v4565_v9 }
 0x333   :  { %1764 = vmatprep.subr.bf16.mxu1 %v3975_v42 }
 0x336   :  { %1765 = vmatpush1.bf16.msra.mxu1 %v3973_v43  ;;  %v3588_v43 = vld.sshfl [vmem:[%s4923_s2 + $0x4] sm:$0x33 pattern:$0x76325410] }
 0x337   :  { %1766 = vmatprep.subr.bf16.mxu1 %v3978_v46 }
 0x33a   :  { %1767 = vmatpush1.bf16.msra.mxu1 %v3976_v47  ;;  %v1959_v47 = vcombine.high %v3588_v43, %v3588_v43 }
 0x33b   :  { %1768 = vmatprep.subr.bf16.mxu1 %v3981_v48 }
 0x33e   :  { %1769 = vmatpush1.bf16.msra.mxu1 %v3979_v49 }
 0x33f   :  { %1770 = vmatprep.subr.bf16.mxu1 %v3984_v50 }
 0x342   :  { %1771 = vmatpush1.bf16.msra.mxu1 %v3982_v51 }
 0x343   :  { %1772 = vmatprep.subr.bf16.mxu1 %v3987_v52 }
 0x346   :  { %1773 = vmatpush1.bf16.msra.mxu1 %v3985_v62 }
 0x347   :  { %1774 = vmatprep.subr.bf16.mxu1 %v3990_v54 }
 0x34a   :  { %1775 = vmatpush1.bf16.msra.mxu1 %v3988_v55 }
 0x34b   :  { %1776 = vmatprep.subr.bf16.mxu1 %v3993_v56  ;;  %v1894_v56 = vrot.slane %v4603_v33, %v4454_v44 }
 0x34e   :  { %1777 = vmatpush1.bf16.msra.mxu1 %v3991_v58 }
 0x34f   :  { %1790 = vmatprep.subr.bf16.mxu1 %v3996_v59 }
 0x352   :  { %1791 = vmatpush2.bf16.msra.mxu1 %v3994_v60  ;;  %v1890_v60 = vrot.slane %v4603_v33, %v4457_v45 }
 0x353   :  { %1792 = vmatprep.subr.bf16.mxu1 %v3999_v61 }
 0x356   :  { %1793 = vmatpush2.bf16.msra.mxu1 %v3997_v1 }
 0x357   :  { %1844 = vmatprep.subr.bf16.mxu1 %v4307_v53 }
 0x359   :  { %1795 = vmatmul.mubr.bf16.vlgmr.msra.gmra.mxu1 %v4573_v15 }
 0x35a   :  { %1845 = vmatpush1.bf16.msra.mxu1 %v4000_v4  ;;  %3585 = vmatprep.mubr.msk.bf16.mxu1 %vm404_vm0, %v4565_v9  ;;  %v4006_v9 = vld [vmem:[#allocation2 + $0x38] ss:$20 sps:$4 sm:$0xff]  }
 0x35b   :  { %1846 = vmatprep.subr.bf16.mxu1 %v4307_v53 }
 0x35e   :  { %1847 = vmatpush1.bf16.msra.mxu1 %v4001_v5 }
 0x35f   :  { %1848 = vmatprep.subr.bf16.mxu1 %v4307_v53 }
 0x362   :  { %1849 = vmatpush1.bf16.msra.mxu1 %v4002_v8 }
 0x363   :  { %1850 = vmatprep.subr.bf16.mxu1 %v4307_v53 }
 0x366   :  { %1851 = vmatpush1.bf16.msra.mxu1 %v4003_v11 }
 0x367   :  { %1852 = vmatprep.subr.bf16.mxu1 %v4307_v53 }
 0x36a   :  { %1853 = vmatpush1.bf16.msra.mxu1 %v4004_v13 }
 0x36b   :  { %1854 = vmatprep.subr.bf16.mxu1 %v4307_v53 }
 0x36e   :  { %1855 = vmatpush1.bf16.msra.mxu1 %v4005_v16 }
 0x36f   :  { %1856 = vmatprep.subr.bf16.mxu1 %v4307_v53 }
 0x372   :  { %1857 = vmatpush1.bf16.msra.mxu1 %v4006_v9 }
 0x373   :  { %1858 = vmatprep.subr.bf16.mxu1 %v4307_v53 }
 0x376   :  { %1859 = vmatpush1.bf16.msra.mxu1 %v4007_v18 }
 0x377   :  { %1872 = vmatprep.subr.bf16.mxu1 %v4307_v53 }
 0x37a   :  { %1873 = vmatpush2.bf16.msra.mxu1 %v4008_v19 }
 0x37b   :  { %1874 = vmatprep.subr.bf16.mxu1 %v4307_v53 }
 0x37e   :  { %1875 = vmatpush2.bf16.msra.mxu1 %v4009_v20 }
 0x381   :  { %1877 = vmatmul.mubr.bf16.vlgmr.msra.gmra.mxu1 %v4573_v15  ;;  %v1902_v15 = vrot.slane %v4603_v33, %v4440_v14 }
 0x3c9   :  { %v4598_v21 = vpop.f32.mrf.mxu1  ;;  %v1837_v25 = vpop.f32.mrf.mxu0 }
 0x3cb   :  { %v970_v26 = vpop.f32.mrf.mxu1  ;;  %v1839_v28 = vpop.f32.mrf.mxu0 }
 0x3cd   :  { %v971_v29 = vpop.f32.mrf.mxu1  ;;  %v1841_v30 = vpop.f32.mrf.mxu0 }
 0x3cf   :  { %v972_v40 = vpop.f32.mrf.mxu1  ;;  %v1842_v31 = vpop.f32.mrf.mxu0 }
 0x3f1   :  { %v1455_v34 = vpop.f32.mrf.mxu1 }
 0x3f2   :  { %v1838_v35 = vadd.f32 %v1837_v25, %v1455_v34 }
 0x3f3   :  { %v1457_v37 = vpop.f32.mrf.mxu1 }
 0x3f4   :  { %v1914_v36 = vadd.f32 %v1898_v12, %v1838_v35  ;;  %v1840_v38 = vadd.f32 %v1839_v28, %v1457_v37 }
 0x3f5   :  { %v1459_v27 = vpop.f32.mrf.mxu1 }
 0x3f6   :  { %4198 = vtanh.f32 %v1914_v36  ;;  %v4609_v39 = vadd.f32 %v1902_v15, %v1840_v38  ;;  %v1919_v29 = vsub.f32 0.0, %v1914_v36 }
 0x3f7   :  { %v1460_v41 = vpop.f32.mrf.mxu1 }
 0x3f8   :  { %4200 = vtanh.f32 %v4609_v39  ;;  %v1924_v30 = vmul.f32 1.442695, %v1919_v29  ;;  %v4070_v29 = vld [vmem:[%s4928_s7 + $0x60] sm:$0xff]  }
 0x403   :  { %v4199_v42 = vpop.eup %4198 }
 0x404   :  { %1971 = vrot.lane.b32.xlu0 %v4199_v42, %s4310_s21 }
 0x405   :  { %v4201_v46 = vpop.eup %4200 }
 0x406   :  { %1973 = vrot.lane.b32.xlu1 %v4201_v46, %s4310_s21 }
 0x408   :  { %1960 = vrot.lane.b32.xlu0 %v3588_v43, %s4306_s18 }
 0x40a   :  { %1962 = vrot.lane.b32.xlu1 %v1959_v47, %s4306_s18  ;;  %v4012_v47 = vld [vmem:[#allocation4 + $0x43c] ss:$20 sps:$4 sm:$0xff]  }
 0x40b   :  { %2573 = vmatprep.subr.bf16.mxu1 %v4012_v47  ;;  %v4046_v47 = vld [vmem:[#allocation4 + $0x358] ss:$20 sps:$4 sm:$0xff]  }
 0x419   :  { %v1796_v48 = vpop.f32.mrf.mxu1 }
 0x41a   :  { %v1797_v59 = vadd.f32 %v1796_v48, %v4561_v2  ;;  %v4010_v48 = vld [vmem:[#allocation4 + $0x438] ss:$20 sps:$4 sm:$0xff]  }
 0x41b   :  { %v1798_v49 = vpop.f32.mrf.mxu1  ;;  %2574 = vmatpush1.bf16.msra.mxu1 %v4010_v48  ;;  %v4047_v48 = vld [vmem:[#allocation4 + $0x330] ss:$20 sps:$4 sm:$0xff]  }
 0x41c   :  { %v1799_v55 = vadd.f32 %v1798_v49, %v4563_v3  ;;  %v1912_v1 = vadd.f32 %v1890_v60, %v1797_v59  ;;  %v4013_v49 = vld [vmem:[#allocation4 + $0x410] ss:$20 sps:$4 sm:$0xff]  }
 0x41d   :  { %v1800_v50 = vpop.f32.mrf.mxu1  ;;  %v4024_v59 = vld [vmem:[#allocation4 + $0x39c] ss:$20 sps:$4 sm:$0xff]  }
 0x41e   :  { %v1913_v61 = vadd.f32 %v1894_v56, %v1799_v55  ;;  %v1917_v5 = vsub.f32 0.0, %v1912_v1  ;;  %v4015_v50 = vld [vmem:[#allocation4 + $0x414] ss:$20 sps:$4 sm:$0xff]  }
 0x41f   :  { %v1801_v51 = vpop.f32.mrf.mxu1  ;;  %2575 = vmatprep.subr.bf16.mxu1 %v4015_v50  ;;  %v4019_v55 = vld [vmem:[#allocation4 + $0x3c0] ss:$20 sps:$4 sm:$0xff]   ;;  %v3623_v56 = vld.sshfl [vmem:[%s4922_s1 + $0x8] sm:$0x33 pattern:$0x76325410] }
 0x420   :  { %v1918_v4 = vsub.f32 0.0, %v1913_v61  ;;  %v1920_v11 = vmul.f32 1.442695, %v1917_v5  ;;  %v4018_v51 = vld [vmem:[#allocation4 + $0x3ec] ss:$20 sps:$4 sm:$0xff]   ;;  %2576 = vmatpush1.bf16.msra.mxu1 %v4013_v49  ;;  %v2244_v60 = vcombine.high %v3623_v56, %v3623_v56 }
 0x421   :  { %2577 = vmatprep.subr.bf16.mxu1 %v4018_v51  ;;  %v4050_v5 = vld [vmem:[%s4928_s7 + $0x88] sm:$0xff]   ;;  %v4049_v50 = vld [vmem:[#allocation4 + $0x470] ss:$20 sps:$4 sm:$0xff]  }
 0x422   :  { %v1922_v8 = vmul.f32 1.442695, %v1918_v4  ;;  %v4645_v1 = vpack.c.bf16 %v2244_v60, %v2244_v60  ;;  %v4022_v4 = vld [vmem:[#allocation4 + $0x398] ss:$20 sps:$4 sm:$0xff]   ;;  %2133 = vmatpush1.bf16.msra.mxu0 %v4050_v5  ;;  %v4053_v51 = vld [vmem:[#allocation2 + $0x2b4] ss:$20 sps:$4 sm:$0xff]  }
 0x423   :  { %2134 = vmatprep.subr.bf16.mxu0 %v4307_v53  ;;  %v4048_v49 = vld [vmem:[#allocation4 + $0x498] ss:$20 sps:$4 sm:$0xff]  }
 0x424   :  { %4202 = vpow2.f32 %v1922_v8  ;;  %v4027_v8 = vld [vmem:[#allocation4 + $0x374] ss:$20 sps:$4 sm:$0xff]   ;;  %3674 = vmatprep.mubr.msk.bf16.mxu1 %vm404_vm0, %v4645_v1  ;;  %v4061_v60 = vld [vmem:[#allocation2 + $0x264] ss:$20 sps:$4 sm:$0xff]  }
 0x425   :  { %4204 = vpow2.f32 %v1920_v11  ;;  %v4054_v11 = vld [vmem:[%s4928_s7 + $0x80] sm:$0xff]  }
 0x426   :  { %2135 = vmatpush1.bf16.msra.mxu0 %v4054_v11  ;;  %v4069_v11 = vld [vmem:[#allocation2 + $0x214] ss:$20 sps:$4 sm:$0xff]  }
 0x427   :  { %2136 = vmatprep.subr.bf16.mxu0 %v4307_v53 }
 0x431   :  { %v4203_v13 = vpop.eup %4202 }
 0x432   :  { %v4205_v16 = vpop.eup %4204  ;;  %v1927_v3 = vadd.f32 1.0, %v4203_v13  ;;  %v4025_v13 = vld [vmem:[#allocation4 + $0x370] ss:$20 sps:$4 sm:$0xff]  }
 0x433   :  { %v1926_v9 = vadd.f32 1.0, %v4205_v16  ;;  %v4030_v16 = vld [vmem:[#allocation4 + $0x34c] ss:$20 sps:$4 sm:$0xff]  }
 0x434   :  { %4206 = vrcp.f32 %v1927_v3  ;;  %v4058_v3 = vld [vmem:[%s4928_s7 + $0x78] sm:$0xff]  }
 0x435   :  { %4208 = vrcp.f32 %v1926_v9  ;;  %v4028_v9 = vld [vmem:[#allocation4 + $0x348] ss:$20 sps:$4 sm:$0xff]   ;;  %2137 = vmatpush1.bf16.msra.mxu0 %v4058_v3 }
 0x436   :  { %4210 = vpow2.f32 %v1924_v30  ;;  %2138 = vmatprep.subr.bf16.mxu0 %v4307_v53  ;;  %v4037_v30 = vld [vmem:[#allocation4 + $0x460] ss:$20 sps:$4 sm:$0xff]   ;;  %v4071_v3 = vld [vmem:[#allocation2 + $0x1e8] ss:$20 sps:$4 sm:$0xff]  }
 0x441   :  { %v4619_v52 = vpop.f32.mrf.mxu1  ;;  %v4207_v18 = vpop.eup %4206 }
 0x442   :  { %v4209_v20 = vpop.eup %4208 }
 0x443   :  { %v1880_v62 = vpop.f32.mrf.mxu1  ;;  %v4211_v40 = vpop.eup %4210 }
 0x444   :  { %v1928_v31 = vadd.f32 1.0, %v4211_v40  ;;  %v4016_v62 = vld [vmem:[#allocation4 + $0x3e8] ss:$20 sps:$4 sm:$0xff]  }
 0x445   :  { %v1881_v54 = vpop.f32.mrf.mxu1  ;;  %2578 = vmatpush1.bf16.msra.mxu1 %v4016_v62  ;;  %v4074_v40 = vld [vmem:[%s4928_s7 + $0x58] sm:$0xff]   ;;  %v4051_v62 = vld [vmem:[#allocation2 + $0x2b0] ss:$20 sps:$4 sm:$0xff]  }
 0x446   :  { %4212 = vrcp.f32 %v1928_v31  ;;  %v4021_v54 = vld [vmem:[#allocation4 + $0x3c4] ss:$20 sps:$4 sm:$0xff]   ;;  %v4675_v31 = vpack.c.bf16 %v3623_v56, %v3623_v56  ;;  %v4057_v56 = vld [vmem:[#allocation2 + $0x28c] ss:$20 sps:$4 sm:$0xff]  }
 0x447   :  { %v1882_v58 = vpop.f32.mrf.mxu1  ;;  %2579 = vmatprep.subr.bf16.mxu1 %v4021_v54  ;;  %v1879_v54 = vadd.f32 %v4619_v52, %v4579_v32  ;;  %v4063_v52 = vld [vmem:[#allocation2 + $0x238] ss:$20 sps:$4 sm:$0xff]  }
 0x449   :  { %2580 = vmatpush1.bf16.msra.mxu1 %v4019_v55  ;;  %v1906_v55 = vrot.slane %v4603_v33, %v4539_v17 }
 0x44a   :  { %2581 = vmatprep.subr.bf16.mxu1 %v4024_v59 }
 0x44b   :  { %v1916_v59 = vadd.f32 %v1906_v55, %v1879_v54  ;;  %v4090_v54 = vld [vmem:[#allocation4 + $0x440] ss:$20 sps:$4 sm:$0xff]  }
 0x44d   :  { %2582 = vmatpush1.bf16.msra.mxu1 %v4022_v4  ;;  %v4059_v4 = vld [vmem:[#allocation2 + $0x260] ss:$20 sps:$4 sm:$0xff]   ;;  %v1938_v5 = vsub.f32 0.0, %v1916_v59 }
 0x44e   :  { %2583 = vmatprep.subr.bf16.mxu1 %v4027_v8  ;;  %v4065_v8 = vld [vmem:[#allocation2 + $0x23c] ss:$20 sps:$4 sm:$0xff]  }
 0x44f   :  { %v1941_v33 = vmul.f32 1.442695, %v1938_v5  ;;  %v4101_v5 = vld [vmem:[#allocation4 + $0x3cc] ss:$20 sps:$4 sm:$0xff]  }
 0x451   :  { %2584 = vmatpush1.bf16.msra.mxu1 %v4025_v13  ;;  %v4067_v13 = vld [vmem:[#allocation2 + $0x210] ss:$20 sps:$4 sm:$0xff]  }
 0x452   :  { %2585 = vmatprep.subr.bf16.mxu1 %v4030_v16  ;;  %v4073_v16 = vld [vmem:[#allocation2 + $0x1ec] ss:$20 sps:$4 sm:$0xff]  }
 0x453   :  { %v4213_v15 = vpop.eup %4212 }
 0x455   :  { %2586 = vmatpush1.bf16.msra.mxu1 %v4028_v9  ;;  %v4075_v9 = vld [vmem:[#allocation2 + $0x1c0] ss:$20 sps:$4 sm:$0xff]  }
 0x476   :  { %v1972_v19 = vpop.permute.xlu0 %1971 }
 0x478   :  { %v1974_v2 = vpop.permute.xlu1 %1973 }
 0x479   :  { %v1975_v25 = vsel %vm774_vm4, %v1972_v19, %v1974_v2  ;;  %v1979_v26 = vmul.f32 %v4207_v18, %v1974_v2  ;;  %v4062_v19 = vld [vmem:[%s4928_s7 + $0x70] sm:$0xff]  }
 0x47a   :  { %v1978_v28 = vmul.f32 %v4209_v20, %v1975_v25  ;;  %v1961_v34 = vpop.permute.xlu0 %1960  ;;  %v4031_v2 = vld [vmem:[#allocation4 + $0x320] ss:$20 sps:$4 sm:$0xff]   ;;  %2139 = vmatpush1.bf16.msra.mxu0 %v4062_v19  ;;  %v4066_v25 = vld [vmem:[%s4928_s7 + $0x68] sm:$0xff]  }
 0x47b   :  { %1984 = vrot.lane.b32.xlu1 %v1979_v26, %s4306_s18  ;;  %v1967_v37 = vmul.f32 %v4207_v18, %v1961_v34  ;;  %v4033_v18 = vld [vmem:[#allocation4 + $0x324] ss:$20 sps:$4 sm:$0xff]   ;;  %v4036_v20 = vld [vmem:[#allocation4 + $0x48c] ss:$20 sps:$4 sm:$0xff]   ;;  %2140 = vmatprep.subr.bf16.mxu0 %v4307_v53  ;;  %v4034_v26 = vld [vmem:[#allocation4 + $0x488] ss:$20 sps:$4 sm:$0xff]  }
 0x47c   :  { %1982 = vrot.lane.b32.xlu0 %v1978_v28, %s4306_s18  ;;  %v1963_v12 = vpop.permute.xlu1 %1962  ;;  %2587 = vmatprep.subr.bf16.mxu1 %v4033_v18  ;;  %v4039_v28 = vld [vmem:[#allocation4 + $0x464] ss:$20 sps:$4 sm:$0xff]   ;;  %v4081_v18 = vld [vmem:[#allocation2 + $0x19c] ss:$20 sps:$4 sm:$0xff]  }
 0x47d   :  { %v1964_v35 = vsel %vm404_vm0, %v1961_v34, %v1963_v12  ;;  %2588 = vmatpush1.bf16.msra.mxu1 %v4031_v2  ;;  %v4040_v12 = vld [vmem:[#allocation4 + $0x448] ss:$20 sps:$4 sm:$0xff]   ;;  %v4078_v34 = vld [vmem:[%s4928_s7 + $0x50] sm:$0xff]   ;;  %v4079_v2 = vld [vmem:[#allocation2 + $0x198] ss:$20 sps:$4 sm:$0xff]  }
 0x47e   :  { %v1968_v27 = vmul.f32 %v4213_v15, %v1964_v35  ;;  %2601 = vmatprep.subr.bf16.mxu1 %v4036_v20  ;;  %2141 = vmatpush1.bf16.msra.mxu0 %v4066_v25  ;;  %v4041_v35 = vld [vmem:[#allocation4 + $0x420] ss:$20 sps:$4 sm:$0xff]   ;;  %v4082_v15 = vld [vmem:[%s4928_s7 + $0x98] sm:$0xff]  }
 0x47f   :  { %2142 = vmatprep.subr.bf16.mxu0 %v4307_v53  ;;  %v4085_v20 = vld [vmem:[#allocation2 + $0x304] ss:$20 sps:$4 sm:$0xff]  }
 0x481   :  { %2602 = vmatpush2.bf16.msra.mxu1 %v4034_v26 }
 0x482   :  { %2603 = vmatprep.subr.bf16.mxu1 %v4039_v28  ;;  %2143 = vmatpush1.bf16.msra.mxu0 %v4070_v29  ;;  %v4083_v28 = vld [vmem:[#allocation2 + $0x300] ss:$20 sps:$4 sm:$0xff]  }
 0x483   :  { %2144 = vmatprep.subr.bf16.mxu0 %v4307_v53 }
 0x485   :  { %2604 = vmatpush2.bf16.msra.mxu1 %v4037_v30  ;;  %v4089_v30 = vld [vmem:[#allocation2 + $0x2dc] ss:$20 sps:$4 sm:$0xff]  }
 0x486   :  { %2655 = vmatprep.subr.bf16.mxu1 %v4307_v53  ;;  %2145 = vmatpush1.bf16.msra.mxu0 %v4074_v40  ;;  %v4087_v40 = vld [vmem:[#allocation2 + $0x2d8] ss:$20 sps:$4 sm:$0xff]  }
 0x487   :  { %2146 = vmatprep.subr.bf16.mxu0 %v4307_v53 }
 0x488   :  { %2606 = vmatmul.mubr.bf16.vlgmr.msra.gmra.mxu1 %v4675_v31 }
 0x489   :  { %2656 = vmatpush1.bf16.msra.mxu1 %v4040_v12  ;;  %3676 = vmatprep.mubr.msk.bf16.mxu1 %vm404_vm0, %v4645_v1  ;;  %v4092_v12 = vld [vmem:[#allocation4 + $0x444] ss:$20 sps:$4 sm:$0xff]  }
 0x48a   :  { %2657 = vmatprep.subr.bf16.mxu1 %v4307_v53  ;;  %2147 = vmatpush1.bf16.msra.mxu0 %v4078_v34 }
 0x48b   :  { %2160 = vmatprep.subr.bf16.mxu0 %v4307_v53 }
 0x48d   :  { %2658 = vmatpush1.bf16.msra.mxu1 %v4041_v35 }
 0x48e   :  { %2659 = vmatprep.subr.bf16.mxu1 %v4307_v53  ;;  %2161 = vmatpush2.bf16.msra.mxu0 %v4082_v15 }
 0x48f   :  { %2162 = vmatprep.subr.bf16.mxu0 %v4307_v53 }
 0x4ed   :  { %v1985_v38 = vpop.permute.xlu1 %1984 }
 0x4ee   :  { %v1983_v41 = vpop.permute.xlu0 %1982 }
 0x4ef   :  { %v1986_v42 = vsel %vm404_vm0, %v1983_v41, %v1985_v38  ;;  %v4632_v43 = vadd.f32 %v1983_v41, %v1967_v37  ;;  %v4042_v37 = vld [vmem:[#allocation4 + $0x3f8] ss:$20 sps:$4 sm:$0xff]   ;;  %v4086_v38 = vld [vmem:[%s4928_s7 + $0x90] sm:$0xff]   ;;  %v4044_v41 = vld [vmem:[#allocation4 + $0x3a8] ss:$20 sps:$4 sm:$0xff]  }
 0x4f0   :  { %v4634_v46 = vadd.f32 %v1986_v42, %v1968_v27  ;;  %2660 = vmatpush1.bf16.msra.mxu1 %v4042_v37  ;;  %v4043_v27 = vld [vmem:[#allocation4 + $0x3d0] ss:$20 sps:$4 sm:$0xff]   ;;  %2163 = vmatpush2.bf16.msra.mxu0 %v4086_v38  ;;  %v4045_v42 = vld [vmem:[#allocation4 + $0x380] ss:$20 sps:$4 sm:$0xff]  }
 0x4f1   :  { %4214 = vtanh.f32 %v4632_v43  ;;  %2661 = vmatprep.subr.bf16.mxu1 %v4307_v53  ;;  %2614 = vmatprep.subr.bf16.mxu0 %v4092_v12  ;;  %v4128_v12 = vld [vmem:[#allocation2 + $0x25c] ss:$20 sps:$4 sm:$0xff]  }
 0x4f2   :  { %4216 = vtanh.f32 %v4634_v46  ;;  %v2023_v36 = vcombine.low %v4632_v43, %v4634_v46 }
 0x4f4   :  { %2662 = vmatpush1.bf16.msra.mxu1 %v4043_v27 }
 0x4f5   :  { %2663 = vmatprep.subr.bf16.mxu1 %v4307_v53 }
 0x4f8   :  { %2664 = vmatpush1.bf16.msra.mxu1 %v4044_v41 }
 0x4f9   :  { %2665 = vmatprep.subr.bf16.mxu1 %v4307_v53 }
 0x4fc   :  { %2666 = vmatpush1.bf16.msra.mxu1 %v4045_v42 }
 0x4fd   :  { %2667 = vmatprep.subr.bf16.mxu1 %v4307_v53 }
 0x4fe   :  { %v4215_v58 = vpop.eup %4214 }
 0x4ff   :  { %v4217_v61 = vpop.eup %4216  ;;  %1995 = vrot.lane.b32.xlu0 %v4215_v58, %s4310_s21  ;;  %v4055_v58 = vld [vmem:[#allocation2 + $0x288] ss:$20 sps:$4 sm:$0xff]  }
 0x500   :  { %1997 = vrot.lane.b32.xlu1 %v4217_v61, %s4310_s21  ;;  %2668 = vmatpush1.bf16.msra.mxu1 %v4046_v47  ;;  %v1937_v61 = vsub.f32 0.0, %v4609_v39  ;;  %v4077_v39 = vld [vmem:[#allocation2 + $0x1c4] ss:$20 sps:$4 sm:$0xff]  }
 0x501   :  { %2669 = vmatprep.subr.bf16.mxu1 %v4307_v53 }
 0x502   :  { %v1939_v32 = vmul.f32 1.442695, %v1937_v61  ;;  %v4098_v61 = vld [vmem:[#allocation4 + $0x3f4] ss:$20 sps:$4 sm:$0xff]  }
 0x504   :  { %2670 = vmatpush1.bf16.msra.mxu1 %v4047_v48  ;;  %4218 = vpow2.f32 %v1939_v32  ;;  %v4104_v32 = vld [vmem:[#allocation4 + $0x3a4] ss:$20 sps:$4 sm:$0xff]  }
 0x505   :  { %2683 = vmatprep.subr.bf16.mxu1 %v4307_v53  ;;  %4220 = vpow2.f32 %v1941_v33  ;;  %v4107_v33 = vld [vmem:[#allocation4 + $0x37c] ss:$20 sps:$4 sm:$0xff]  }
 0x508   :  { %2684 = vmatpush2.bf16.msra.mxu1 %v4048_v49 }
 0x509   :  { %2685 = vmatprep.subr.bf16.mxu1 %v4307_v53 }
 0x50c   :  { %2686 = vmatpush2.bf16.msra.mxu1 %v4049_v50 }
 0x50d   :  { %2996 = vmatprep.subr.bf16.mxu1 %v4053_v51 }
 0x50f   :  { %2688 = vmatmul.mubr.bf16.vlgmr.msra.gmra.mxu1 %v4675_v31 }
 0x510   :  { %2997 = vmatpush1.bf16.msra.mxu1 %v4051_v62 }
 0x511   :  { %2998 = vmatprep.subr.bf16.mxu1 %v4057_v56  ;;  %v4219_v19 = vpop.eup %4218  ;;  %v4095_v56 = vld [vmem:[#allocation4 + $0x41c] ss:$20 sps:$4 sm:$0xff]  }
 0x512   :  { %v4221_v25 = vpop.eup %4220  ;;  %v1943_v26 = vadd.f32 1.0, %v4219_v19 }
 0x513   :  { %v1944_v29 = vadd.f32 1.0, %v4221_v25 }
 0x514   :  { %2999 = vmatpush1.bf16.msra.mxu1 %v4055_v58  ;;  %4222 = vrcp.f32 %v1943_v26  ;;  %v4117_v26 = vld [vmem:[#allocation4 + $0x468] ss:$20 sps:$4 sm:$0xff]  }
 0x515   :  { %3000 = vmatprep.subr.bf16.mxu1 %v4061_v60  ;;  %4224 = vrcp.f32 %v1944_v29  ;;  %v4093_v60 = vld [vmem:[#allocation4 + $0x418] ss:$20 sps:$4 sm:$0xff]   ;;  %v4120_v29 = vld [vmem:[#allocation2 + $0x2a8] ss:$20 sps:$4 sm:$0xff]  }
 0x518   :  { %3001 = vmatpush1.bf16.msra.mxu1 %v4059_v4  ;;  %v4096_v4 = vld [vmem:[#allocation4 + $0x3f0] ss:$20 sps:$4 sm:$0xff]  }
 0x519   :  { %3002 = vmatprep.subr.bf16.mxu1 %v4065_v8  ;;  %v4099_v8 = vld [vmem:[#allocation4 + $0x3c8] ss:$20 sps:$4 sm:$0xff]  }
 0x51c   :  { %3003 = vmatpush1.bf16.msra.mxu1 %v4063_v52  ;;  %v4102_v52 = vld [vmem:[#allocation4 + $0x3a0] ss:$20 sps:$4 sm:$0xff]  }
 0x51d   :  { %3004 = vmatprep.subr.bf16.mxu1 %v4069_v11  ;;  %v4105_v11 = vld [vmem:[#allocation4 + $0x378] ss:$20 sps:$4 sm:$0xff]  }
 0x520   :  { %3005 = vmatpush1.bf16.msra.mxu1 %v4067_v13  ;;  %v4110_v13 = vld [vmem:[#allocation4 + $0x354] ss:$20 sps:$4 sm:$0xff]  }
 0x521   :  { %3006 = vmatprep.subr.bf16.mxu1 %v4073_v16  ;;  %v4223_v34 = vpop.eup %4222  ;;  %v4113_v16 = vld [vmem:[#allocation4 + $0x32c] ss:$20 sps:$4 sm:$0xff]  }
 0x522   :  { %v4225_v38 = vpop.eup %4224 }
 0x524   :  { %3007 = vmatpush1.bf16.msra.mxu1 %v4071_v3 }
 0x525   :  { %3008 = vmatprep.subr.bf16.mxu1 %v4077_v39  ;;  %v4111_v39 = vld [vmem:[#allocation4 + $0x328] ss:$20 sps:$4 sm:$0xff]  }
 0x528   :  { %3009 = vmatpush1.bf16.msra.mxu1 %v4075_v9  ;;  %v4116_v9 = vld [vmem:[#allocation4 + $0x494] ss:$20 sps:$4 sm:$0xff]  }
 0x529   :  { %3010 = vmatprep.subr.bf16.mxu1 %v4081_v18 }
 0x52c   :  { %3011 = vmatpush1.bf16.msra.mxu1 %v4079_v2  ;;  %v4114_v2 = vld [vmem:[#allocation4 + $0x490] ss:$20 sps:$4 sm:$0xff]  }
 0x52d   :  { %3024 = vmatprep.subr.bf16.mxu1 %v4085_v20  ;;  %v4119_v20 = vld [vmem:[#allocation4 + $0x46c] ss:$20 sps:$4 sm:$0xff]  }
 0x530   :  { %3025 = vmatpush2.bf16.msra.mxu1 %v4083_v28  ;;  %v4122_v28 = vld [vmem:[#allocation2 + $0x2ac] ss:$20 sps:$4 sm:$0xff]  }
 0x531   :  { %3026 = vmatprep.subr.bf16.mxu1 %v4089_v30  ;;  %v4125_v30 = vld [vmem:[#allocation2 + $0x284] ss:$20 sps:$4 sm:$0xff]  }
 0x534   :  { %3027 = vmatpush2.bf16.msra.mxu1 %v4087_v40  ;;  %v4123_v40 = vld [vmem:[#allocation2 + $0x280] ss:$20 sps:$4 sm:$0xff]  }
 0x535   :  { %3325 = vmatprep.subr.bf16.mxu1 %v4307_v53 }
 0x548   :  { %v4723_v49 = vpop.f32.mrf.mxu1 }
 0x54a   :  { %v4725_v50 = vpop.f32.mrf.mxu1 }
 0x54c   :  { %v2611_v51 = vpop.f32.mrf.mxu1 }
 0x54d   :  { %v4138_v51 = vld [vmem:[#allocation2 + $0x1b8] ss:$20 sps:$4 sm:$0xff]  }
 0x54e   :  { %v2612_v58 = vpop.f32.mrf.mxu1 }
 0x54f   :  { %v4144_v58 = vld [vmem:[#allocation2 + $0x2f8] ss:$20 sps:$4 sm:$0xff]  }
 0x571   :  { %v1996_v35 = vpop.permute.xlu0 %1995 }
 0x572   :  { %v4710_v15 = vmul.f32 %v4223_v34, %v1996_v35  ;;  %v1998_v37 = vpop.permute.xlu1 %1997  ;;  %v4126_v34 = vld [vmem:[#allocation2 + $0x258] ss:$20 sps:$4 sm:$0xff]  }
 0x573   :  { %v1999_v27 = vsel %vm774_vm4, %v1996_v35, %v1998_v37  ;;  %v4131_v35 = vld [vmem:[#allocation2 + $0x234] ss:$20 sps:$4 sm:$0xff]   ;;  %v4129_v37 = vld [vmem:[#allocation2 + $0x230] ss:$20 sps:$4 sm:$0xff]  }
 0x574   :  { %v2038_v41 = vpack.c.bf16 %v4710_v15, %v4710_v15  ;;  %v4715_v42 = vmul.f32 %v4225_v38, %v1999_v27  ;;  %v4134_v38 = vld [vmem:[#allocation2 + $0x20c] ss:$20 sps:$4 sm:$0xff]   ;;  %v4132_v27 = vld [vmem:[#allocation2 + $0x208] ss:$20 sps:$4 sm:$0xff]  }
 0x576   :  { %v2006_v47 = vcombine.low %v4710_v15, %v4715_v42  ;;  %2063 = vrot.lane.b32.xlu0 %v2038_v41, %s4306_s18  ;;  %v2039_v48 = vpack.c.bf16 %v4715_v42, %v4715_v42  ;;  %v4137_v41 = vld [vmem:[#allocation2 + $0x1e4] ss:$20 sps:$4 sm:$0xff]  }
 0x578   :  { %2065 = vrot.lane.b32.xlu1 %v2039_v48, %s4306_s18  ;;  %v4140_v48 = vld [vmem:[#allocation2 + $0x1bc] ss:$20 sps:$4 sm:$0xff]  }
 0x5cf   :  { %v4741_v3 = vpop.f32.mrf.mxu1 }
 0x5d1   :  { %v2691_v18 = vpop.f32.mrf.mxu1 }
 0x5d3   :  { %v2692_v19 = vpop.f32.mrf.mxu1 }
 0x5d5   :  { %v2693_v25 = vpop.f32.mrf.mxu1 }
 0x5e8   :  { %v2064_v62 = vpop.permute.xlu0 %2063 }
 0x5ea   :  { %v4727_v55 = vpop.permute.xlu1 %2065 }
 0x5eb   :  { %3621 = vmatprep.mubr.msk.bf16.mxu0 %vm404_vm0, %v4727_v55  ;;  %3728 = vmatprep.mubr.msk.bf16.mxu1 %vm404_vm0, %v4727_v55  ;;  %v4735_v59 = vsel %vm404_vm0, %v2064_v62, %v4727_v55  ;;  %v4143_v62 = vld [vmem:[#allocation2 + $0x194] ss:$20 sps:$4 sm:$0xff]  }
 0x5ec   :  { %2165 = vmatmul.mubr.bf16.vlgmr.msra.gmra.mxu0 %v4735_v59  ;;  %3029 = vmatmul.mubr.bf16.vlgmr.msra.gmra.mxu1 %v4735_v59 }
 0x5ed   :  { %2615 = vmatpush1.bf16.msra.mxu0 %v4090_v54  ;;  %3675 = vmatprep.mubr.msk.bf16.mxu0 %vm404_vm0, %v4645_v1  ;;  %v4108_v1 = vld [vmem:[#allocation4 + $0x350] ss:$20 sps:$4 sm:$0xff]  }
 0x5ee   :  { %2616 = vmatprep.subr.bf16.mxu0 %v4095_v56  ;;  %v4141_v54 = vld [vmem:[#allocation2 + $0x190] ss:$20 sps:$4 sm:$0xff]  }
 0x5ef   :  { %v4146_v56 = vld [vmem:[#allocation2 + $0x2fc] ss:$20 sps:$4 sm:$0xff]  }
 0x5f1   :  { %2617 = vmatpush1.bf16.msra.mxu0 %v4093_v60  ;;  %v4149_v60 = vld [vmem:[#allocation2 + $0x2d4] ss:$20 sps:$4 sm:$0xff]  }
 0x5f2   :  { %2618 = vmatprep.subr.bf16.mxu0 %v4098_v61  ;;  %v4147_v61 = vld [vmem:[#allocation2 + $0x2d0] ss:$20 sps:$4 sm:$0xff]  }
 0x5f5   :  { %2619 = vmatpush1.bf16.msra.mxu0 %v4096_v4  ;;  %v4150_v4 = vld [vmem:[#allocation2 + $0x2b8] ss:$20 sps:$4 sm:$0xff]  }
 0x5f6   :  { %2620 = vmatprep.subr.bf16.mxu0 %v4101_v5  ;;  %v4151_v5 = vld [vmem:[#allocation2 + $0x290] ss:$20 sps:$4 sm:$0xff]  }
 0x5f9   :  { %2621 = vmatpush1.bf16.msra.mxu0 %v4099_v8  ;;  %v4152_v8 = vld [vmem:[#allocation2 + $0x268] ss:$20 sps:$4 sm:$0xff]  }
 0x5fa   :  { %2622 = vmatprep.subr.bf16.mxu0 %v4104_v32  ;;  %v4153_v32 = vld [vmem:[#allocation2 + $0x240] ss:$20 sps:$4 sm:$0xff]  }
 0x5fd   :  { %2623 = vmatpush1.bf16.msra.mxu0 %v4102_v52  ;;  %v4154_v52 = vld [vmem:[#allocation2 + $0x218] ss:$20 sps:$4 sm:$0xff]  }
 0x5fe   :  { %2624 = vmatprep.subr.bf16.mxu0 %v4107_v33  ;;  %v4155_v33 = vld [vmem:[#allocation2 + $0x1f0] ss:$20 sps:$4 sm:$0xff]  }
 0x601   :  { %2625 = vmatpush1.bf16.msra.mxu0 %v4105_v11  ;;  %v4157_v11 = vld [vmem:[#allocation2 + $0x1a0] ss:$20 sps:$4 sm:$0xff]  }
 0x602   :  { %2626 = vmatprep.subr.bf16.mxu0 %v4110_v13  ;;  %v4158_v13 = vld [vmem:[#allocation2 + $0x308] ss:$20 sps:$4 sm:$0xff]  }
 0x605   :  { %2627 = vmatpush1.bf16.msra.mxu0 %v4108_v1  ;;  %v4159_v1 = vld [vmem:[#allocation2 + $0x2e0] ss:$20 sps:$4 sm:$0xff]  }
 0x606   :  { %2628 = vmatprep.subr.bf16.mxu0 %v4113_v16  ;;  %v3477_v16 = vld [vmem:[%s4929_s8] ss:$0 sm:$0xff] }
 0x609   :  { %2629 = vmatpush1.bf16.msra.mxu0 %v4111_v39  ;;  %v980_v39 = vadd.f32 %v3477_v16, %v4598_v21 }
 0x60a   :  { %2642 = vmatprep.subr.bf16.mxu0 %v4116_v9 }
 0x60d   :  { %2643 = vmatpush2.bf16.msra.mxu0 %v4114_v2 }
 0x60e   :  { %2644 = vmatprep.subr.bf16.mxu0 %v4119_v20 }
 0x611   :  { %2645 = vmatpush2.bf16.msra.mxu0 %v4117_v26 }
 0x612   :  { %2955 = vmatprep.subr.bf16.mxu0 %v4122_v28 }
 0x614   :  { %2647 = vmatmul.mubr.bf16.vlgmr.msra.gmra.mxu0 %v4675_v31  ;;  %v4135_v31 = vld [vmem:[#allocation2 + $0x1e0] ss:$20 sps:$4 sm:$0xff]  }
 0x615   :  { %2956 = vmatpush1.bf16.msra.mxu0 %v4120_v29  ;;  %3727 = vmatprep.mubr.msk.bf16.mxu0 %vm404_vm0, %v4727_v55 }
 0x616   :  { %2957 = vmatprep.subr.bf16.mxu0 %v4125_v30 }
 0x619   :  { %2958 = vmatpush1.bf16.msra.mxu0 %v4123_v40 }
 0x61a   :  { %2959 = vmatprep.subr.bf16.mxu0 %v4128_v12 }
 0x61d   :  { %2960 = vmatpush1.bf16.msra.mxu0 %v4126_v34 }
 0x61e   :  { %2961 = vmatprep.subr.bf16.mxu0 %v4131_v35 }
 0x621   :  { %2962 = vmatpush1.bf16.msra.mxu0 %v4129_v37 }
 0x622   :  { %2963 = vmatprep.subr.bf16.mxu0 %v4134_v38 }
 0x625   :  { %2964 = vmatpush1.bf16.msra.mxu0 %v4132_v27 }
 0x626   :  { %2965 = vmatprep.subr.bf16.mxu0 %v4137_v41 }
 0x629   :  { %2966 = vmatpush1.bf16.msra.mxu0 %v4135_v31 }
 0x62a   :  { %2967 = vmatprep.subr.bf16.mxu0 %v4140_v48 }
 0x62d   :  { %2968 = vmatpush1.bf16.msra.mxu0 %v4138_v51 }
 0x62e   :  { %2969 = vmatprep.subr.bf16.mxu0 %v4143_v62 }
 0x631   :  { %2970 = vmatpush1.bf16.msra.mxu0 %v4141_v54 }
 0x632   :  { %2983 = vmatprep.subr.bf16.mxu0 %v4146_v56 }
 0x635   :  { %2984 = vmatpush2.bf16.msra.mxu0 %v4144_v58 }
 0x636   :  { %2985 = vmatprep.subr.bf16.mxu0 %v4149_v60 }
 0x639   :  { %2986 = vmatpush2.bf16.msra.mxu0 %v4147_v61 }
 0x63a   :  { %3037 = vmatprep.subr.bf16.mxu0 %v4307_v53 }
 0x63c   :  { %2988 = vmatmul.mubr.bf16.vlgmr.msra.gmra.mxu0 %v4735_v59 }
 0x63d   :  { %3038 = vmatpush1.bf16.msra.mxu0 %v4150_v4  ;;  %3729 = vmatprep.mubr.msk.bf16.mxu0 %vm404_vm0, %v4727_v55  ;;  %v4156_v55 = vld [vmem:[#allocation2 + $0x1c8] ss:$20 sps:$4 sm:$0xff]  }
 0x63e   :  { %3039 = vmatprep.subr.bf16.mxu0 %v4307_v53 }
 0x641   :  { %3040 = vmatpush1.bf16.msra.mxu0 %v4151_v5 }
 0x642   :  { %3041 = vmatprep.subr.bf16.mxu0 %v4307_v53 }
 0x645   :  { %3042 = vmatpush1.bf16.msra.mxu0 %v4152_v8 }
 0x646   :  { %3043 = vmatprep.subr.bf16.mxu0 %v4307_v53 }
 0x649   :  { %3044 = vmatpush1.bf16.msra.mxu0 %v4153_v32 }
 0x64a   :  { %3045 = vmatprep.subr.bf16.mxu0 %v4307_v53 }
 0x64d   :  { %3046 = vmatpush1.bf16.msra.mxu0 %v4154_v52 }
 0x64e   :  { %3047 = vmatprep.subr.bf16.mxu0 %v4307_v53 }
 0x651   :  { %3048 = vmatpush1.bf16.msra.mxu0 %v4155_v33 }
 0x652   :  { %3049 = vmatprep.subr.bf16.mxu0 %v4307_v53 }
 0x655   :  { %3050 = vmatpush1.bf16.msra.mxu0 %v4156_v55 }
 0x656   :  { %3051 = vmatprep.subr.bf16.mxu0 %v4307_v53 }
 0x659   :  { %3052 = vmatpush1.bf16.msra.mxu0 %v4157_v11 }
 0x65a   :  { %3065 = vmatprep.subr.bf16.mxu0 %v4307_v53 }
 0x65d   :  { %3066 = vmatpush2.bf16.msra.mxu0 %v4158_v13 }
 0x65e   :  { %3067 = vmatprep.subr.bf16.mxu0 %v4307_v53 }
 0x661   :  { %3068 = vmatpush2.bf16.msra.mxu0 %v4159_v1 }
 0x664   :  { %3070 = vmatmul.mubr.bf16.vlgmr.msra.gmra.mxu0 %v4735_v59  ;;  %v4769_v59 = vld [vmem:[%s4927_s6 + $0xa] sm:$0x1f] }
 0x665   :  { %v3091_v30 = vrot.slane %v4769_v59, %v4432_v10  ;;  %v3095_v12 = vrot.slane %v4769_v59, %v4440_v14  ;;  %v3732_v10 = vld.sshfl [vmem:[%s4923_s2 + $0x8] sm:$0x33 pattern:$0x76325410]  ;;  %v3087_v5 = vrot.slane %v4769_v59, %v4454_v44  ;;  %v3083_v52 = vrot.slane %v4769_v59, %v4457_v45 }
 0x666   :  { %v3152_v14 = vcombine.high %v3732_v10, %v3732_v10 }
 0x6ac   :  { %v2166_v9 = vpop.f32.mrf.mxu0  ;;  %v3030_v18 = vpop.f32.mrf.mxu1 }
 0x6ad   :  { %v4764_v19 = vadd.f32 %v2166_v9, %v980_v39 }
 0x6ae   :  { %v2168_v2 = vpop.f32.mrf.mxu0  ;;  %v3032_v20 = vpop.f32.mrf.mxu1 }
 0x6b0   :  { %v2169_v25 = vpop.f32.mrf.mxu0  ;;  %v3034_v26 = vpop.f32.mrf.mxu1 }
 0x6b2   :  { %v2170_v28 = vpop.f32.mrf.mxu0  ;;  %v3035_v29 = vpop.f32.mrf.mxu1 }
 0x6d4   :  { %v2648_v40 = vpop.f32.mrf.mxu0 }
 0x6d5   :  { %v3031_v21 = vadd.f32 %v3030_v18, %v2648_v40 }
 0x6d6   :  { %v2650_v34 = vpop.f32.mrf.mxu0 }
 0x6d7   :  { %v3107_v35 = vadd.f32 %v3091_v30, %v3031_v21  ;;  %v3033_v37 = vadd.f32 %v3032_v20, %v2650_v34 }
 0x6d8   :  { %v2652_v38 = vpop.f32.mrf.mxu0 }
 0x6d9   :  { %4226 = vtanh.f32 %v3107_v35  ;;  %v4775_v27 = vadd.f32 %v3095_v12, %v3033_v37  ;;  %v3112_v28 = vsub.f32 0.0, %v3107_v35 }
 0x6da   :  { %v2653_v41 = vpop.f32.mrf.mxu0 }
 0x6db   :  { %4228 = vtanh.f32 %v4775_v27  ;;  %v3117_v29 = vmul.f32 1.442695, %v3112_v28 }
 0x6e6   :  { %v4227_v31 = vpop.eup %4226 }
 0x6e7   :  { %3164 = vrot.lane.b32.xlu0 %v4227_v31, %s4310_s21 }
 0x6e8   :  { %v4229_v48 = vpop.eup %4228 }
 0x6e9   :  { %3166 = vrot.lane.b32.xlu1 %v4229_v48, %s4310_s21 }
 0x6eb   :  { %3153 = vrot.lane.b32.xlu0 %v3732_v10, %s4306_s18 }
 0x6ed   :  { %3155 = vrot.lane.b32.xlu1 %v3152_v14, %s4306_s18 }
 0x6fc   :  { %v2989_v51 = vpop.f32.mrf.mxu0 }
 0x6fd   :  { %v2990_v32 = vadd.f32 %v2989_v51, %v4723_v49 }
 0x6fe   :  { %v2991_v62 = vpop.f32.mrf.mxu0 }
 0x6ff   :  { %v2992_v4 = vadd.f32 %v2991_v62, %v4725_v50  ;;  %v3105_v55 = vadd.f32 %v3083_v52, %v2990_v32  ;;  %v4166_v32 = vld [vmem:[%s4928_s7 + $0xa8] sm:$0xff]   ;;  %v4167_v52 = vld [vmem:[%s4928_s7 + $0xa0] sm:$0xff]  }
 0x700   :  { %v2993_v54 = vpop.f32.mrf.mxu0 }
 0x701   :  { %v3106_v33 = vadd.f32 %v3087_v5, %v2992_v4  ;;  %v3110_v13 = vsub.f32 0.0, %v3105_v55  ;;  %v4163_v4 = vld [vmem:[%s4928_s7 + $0xc0] sm:$0xff]   ;;  %v4164_v5 = vld [vmem:[%s4928_s7 + $0xb8] sm:$0xff]  }
 0x702   :  { %v2994_v56 = vpop.f32.mrf.mxu0 }
 0x703   :  { %v3111_v11 = vsub.f32 0.0, %v3106_v33  ;;  %v3113_v16 = vmul.f32 1.442695, %v3110_v13  ;;  %v4160_v56 = vld [vmem:[%s4928_s7 + $0xd8] sm:$0xff]   ;;  %v4168_v33 = vld [vmem:[%s4928_s7 + $0xe8] sm:$0xff]  }
 0x704   :  { %3326 = vmatpush1.bf16.msra.mxu1 %v4160_v56 }
 0x705   :  { %v3115_v1 = vmul.f32 1.442695, %v3111_v11  ;;  %3327 = vmatprep.subr.bf16.mxu1 %v4307_v53  ;;  %v3099_v11 = vrot.slane %v4769_v59, %v4539_v17  ;;  %v4311_v17 = vmov 1983009808  }
 0x707   :  { %4230 = vpow2.f32 %v3115_v1  ;;  %v3130_v1 = vsub.f32 0.0, %v4775_v27 }
 0x708   :  { %4232 = vpow2.f32 %v3113_v16 }
 0x714   :  { %v4231_v39 = vpop.eup %4230 }
 0x715   :  { %v4233_v9 = vpop.eup %4232  ;;  %v3120_v50 = vadd.f32 1.0, %v4231_v39  ;;  %v3132_v39 = vmul.f32 1.442695, %v3130_v1 }
 0x716   :  { %v3119_v18 = vadd.f32 1.0, %v4233_v9 }
 0x717   :  { %4234 = vrcp.f32 %v3120_v50 }
 0x718   :  { %4236 = vrcp.f32 %v3119_v18 }
 0x719   :  { %4238 = vpow2.f32 %v3117_v29 }
 0x724   :  { %v4785_v58 = vpop.f32.mrf.mxu0  ;;  %v4235_v44 = vpop.eup %4234 }
 0x725   :  { %v4237_v20 = vpop.eup %4236  ;;  %v3072_v55 = vadd.f32 %v4785_v58, %v4741_v3  ;;  %v808_v3 = vunpack.c.l.s4 %v4311_v17 }
 0x726   :  { %v3073_v60 = vpop.f32.mrf.mxu0  ;;  %v4239_v30 = vpop.eup %4238 }
 0x727   :  { %v3121_v40 = vadd.f32 1.0, %v4239_v30  ;;  %v4161_v60 = vld [vmem:[%s4928_s7 + $0xd0] sm:$0xff]   ;;  %v3109_v13 = vadd.f32 %v3099_v11, %v3072_v55 }
 0x728   :  { %v3074_v61 = vpop.f32.mrf.mxu0  ;;  %3328 = vmatpush1.bf16.msra.mxu1 %v4161_v60 }
 0x729   :  { %4240 = vrcp.f32 %v3121_v40  ;;  %v4162_v61 = vld [vmem:[%s4928_s7 + $0xc8] sm:$0xff]   ;;  %3329 = vmatprep.subr.bf16.mxu1 %v4307_v53  ;;  %v3131_v16 = vsub.f32 0.0, %v3109_v13 }
 0x72a   :  { %v3075_v8 = vpop.f32.mrf.mxu0 }
 0x72b   :  { %v4165_v8 = vld [vmem:[%s4928_s7 + $0xb0] sm:$0xff]   ;;  %v3134_v9 = vmul.f32 1.442695, %v3131_v16 }
 0x72c   :  { %3330 = vmatpush1.bf16.msra.mxu1 %v4162_v61 }
 0x72d   :  { %3331 = vmatprep.subr.bf16.mxu1 %v4307_v53 }
 0x730   :  { %3332 = vmatpush1.bf16.msra.mxu1 %v4163_v4 }
 0x731   :  { %3333 = vmatprep.subr.bf16.mxu1 %v4307_v53 }
 0x734   :  { %3334 = vmatpush1.bf16.msra.mxu1 %v4164_v5 }
 0x735   :  { %3335 = vmatprep.subr.bf16.mxu1 %v4307_v53 }
 0x736   :  { %v4241_v37 = vpop.eup %4240 }
 0x738   :  { %3336 = vmatpush1.bf16.msra.mxu1 %v4165_v8 }
 0x739   :  { %3337 = vmatprep.subr.bf16.mxu1 %v4307_v53 }
 0x73c   :  { %3338 = vmatpush1.bf16.msra.mxu1 %v4166_v32 }
 0x73d   :  { %3339 = vmatprep.subr.bf16.mxu1 %v4307_v53 }
 0x740   :  { %3340 = vmatpush1.bf16.msra.mxu1 %v4167_v52 }
 0x741   :  { %3353 = vmatprep.subr.bf16.mxu1 %v4307_v53 }
 0x744   :  { %3354 = vmatpush2.bf16.msra.mxu1 %v4168_v33 }
 0x745   :  { %3355 = vmatprep.subr.bf16.mxu1 %v4307_v53  ;;  %v4169_v53 = vld [vmem:[%s4928_s7 + $0xe0] sm:$0xff]   ;;  %s4312_s7 = smov 96  }
 0x748   :  { %3356 = vmatpush2.bf16.msra.mxu1 %v4169_v53 }
 0x759   :  { %v3165_v2 = vpop.permute.xlu0 %3164 }
 0x75b   :  { %v3167_v49 = vpop.permute.xlu1 %3166 }
 0x75c   :  { %v3168_v45 = vsel %vm774_vm4, %v3165_v2, %v3167_v49  ;;  %v3172_v25 = vmul.f32 %v4235_v44, %v3167_v49 }
 0x75d   :  { %v3171_v26 = vmul.f32 %v4237_v20, %v3168_v45  ;;  %v3154_v12 = vpop.permute.xlu0 %3153  ;;  %v809_v20 = vunpack.c.0.s8 %v808_v3 }
 0x75e   :  { %3177 = vrot.lane.b32.xlu1 %v3172_v25, %s4306_s18  ;;  %v3160_v38 = vmul.f32 %v4235_v44, %v3154_v12 }
 0x75f   :  { %3175 = vrot.lane.b32.xlu0 %v3171_v26, %s4306_s18  ;;  %v3156_v21 = vpop.permute.xlu1 %3155  ;;  %v812_v40 = vsub.s32 %v809_v20, %v4429_v7 }
 0x760   :  { %v3157_v34 = vsel %vm404_vm0, %v3154_v12, %v3156_v21 }
 0x761   :  { %v3161_v31 = vmul.f32 %v4241_v37, %v3157_v34  ;;  %v813_v21 = vrot.slane %v806_v0, %v812_v40  ;;  %v832_v12 = vrot.slane %v825_v24, %v812_v40  ;;  %v2013_v34 = vrot.slane %v2006_v47, %v812_v40 }
 0x762   :  { %v2030_v7 = vrot.slane %v2023_v36, %v812_v40 }
 0x7d0   :  { %v3178_v41 = vpop.permute.xlu1 %3177 }
 0x7d1   :  { %v3176_v10 = vpop.permute.xlu0 %3175 }
 0x7d2   :  { %v3179_v48 = vsel %vm404_vm0, %v3176_v10, %v3178_v41  ;;  %v4798_v14 = vadd.f32 %v3176_v10, %v3160_v38 }
 0x7d3   :  { %v4800_v51 = vadd.f32 %v3179_v48, %v3161_v31 }
 0x7d4   :  { %4242 = vtanh.f32 %v4798_v14 }
 0x7d5   :  { %4244 = vtanh.f32 %v4800_v51  ;;  %v3216_v35 = vcombine.low %v4798_v14, %v4800_v51 }
 0x7d6   :  { %4246 = vpow2.f32 %v3132_v39  ;;  %v3367_v39 = vand.u32 127, %v687_v6 }
 0x7d7   :  { %4248 = vpow2.f32 %v3134_v9  ;;  %v3223_v22 = vrot.slane %v3216_v35, %v812_v40 }
 0x7d8   :  { %vm3368_vm10 = vcmp.lt.s32.totalorder %v3367_v39, 1 }
 0x7e1   :  { %v4243_v62 = vpop.eup %4242 }
 0x7e2   :  { %v4245_v54 = vpop.eup %4244  ;;  %3188 = vrot.lane.b32.xlu0 %v4243_v62, %s4310_s21 }
 0x7e3   :  { %3190 = vrot.lane.b32.xlu1 %v4245_v54, %s4310_s21  ;;  %v4247_v50 = vpop.eup %4246 }
 0x7e4   :  { %v4249_v18 = vpop.eup %4248  ;;  %v3136_v44 = vadd.f32 1.0, %v4247_v50 }
 0x7e5   :  { %v3137_v2 = vadd.f32 1.0, %v4249_v18 }
 0x7e6   :  { %4250 = vrcp.f32 %v3136_v44 }
 0x7e7   :  { %4252 = vrcp.f32 %v3137_v2 }
 0x7f3   :  { %v4251_v59 = vpop.eup %4250 }
 0x7f4   :  { %v4253_v45 = vpop.eup %4252 }
 0x854   :  { %v3189_v27 = vpop.permute.xlu0 %3188 }
 0x855   :  { %v3195_v58 = vmul.f32 %v4251_v59, %v3189_v27  ;;  %v3191_v49 = vpop.permute.xlu1 %3190 }
 0x856   :  { %v3192_v25 = vsel %vm774_vm4, %v3189_v27, %v3191_v49 }
 0x857   :  { %v3231_v26 = vpack.c.bf16 %v3195_v58, %v3195_v58  ;;  %v3196_v28 = vmul.f32 %v4253_v45, %v3192_v25 }
 0x859   :  { %v3199_v29 = vcombine.low %v3195_v58, %v3196_v28  ;;  %3256 = vrot.lane.b32.xlu0 %v3231_v26, %s4306_s18  ;;  %v3232_v30 = vpack.c.bf16 %v3196_v28, %v3196_v28 }
 0x85b   :  { %3258 = vrot.lane.b32.xlu1 %v3232_v30, %s4306_s18  ;;  %v3206_v57 = vrot.slane %v3199_v29, %v812_v40 }
 0x85d   :  { %814 = vrot.lane.b32.xlu0 %v813_v21, %s4306_s18 }
 0x85f   :  { %833 = vrot.lane.b32.xlu1 %v832_v12, %s4312_s7 }
 0x861   :  { %2014 = vrot.lane.b32.xlu0 %v2013_v34, %s4306_s18 }
 0x863   :  { %2031 = vrot.lane.b32.xlu1 %v2030_v7, %s4312_s7 }
 0x865   :  { %3207 = vrot.lane.b32.xlu0 %v3206_v57, %s4306_s18 }
 0x867   :  { %3224 = vrot.lane.b32.xlu1 %v3223_v22, %s4312_s7 }
 0x8cb   :  { %v3257_v23 = vpop.permute.xlu0 %3256 }
 0x8cd   :  { %v3259_v24 = vpop.permute.xlu1 %3258 }
 0x8ce   :  { %v3260_v63 = vsel %vm404_vm0, %v3257_v23, %v3259_v24  ;;  %3765 = vmatprep.mubr.msk.bf16.mxu1 %vm404_vm0, %v3259_v24 }
 0x8cf   :  { %3358 = vmatmul.mubr.bf16.vlgmr.msra.gmra.mxu1 %v3260_v63  ;;  %v815_v0 = vpop.permute.xlu0 %814 }
 0x8d0   :  { %v816_v46 = vrot.slane %v815_v0, 2 }
 0x8d1   :  { %v834_v36 = vpop.permute.xlu1 %833 }
 0x8d2   :  { %v817_v15 = vsel %vm404_vm0, %v815_v0, %v816_v46  ;;  %v835_v42 = vrot.slane %v834_v36, 2 }
 0x8d3   :  { %822 = vst.msk [vmem:[%s4931_s10] sm:$0xf] %vm4876_vm7, %v817_v15  ;;  %v2015_v47 = vpop.permute.xlu0 %2014 }
 0x8d4   :  { %v837_v37 = vsel %vm836_vm8, %v834_v36, %v835_v42  ;;  %v2016_v38 = vrot.slane %v2015_v47, 2 }
 0x8d5   :  { %839 = vst.msk [vmem:[%s4932_s11] sm:$0xf] %vm4876_vm7, %v837_v37  ;;  %v2032_v41 = vpop.permute.xlu1 %2031 }
 0x8d6   :  { %v2017_v31 = vsel %vm404_vm0, %v2015_v47, %v2016_v38  ;;  %v2033_v10 = vrot.slane %v2032_v41, 2 }
 0x8d7   :  { %3589 = vst.msk [vmem:[%s4931_s10 + $0x4] sm:$0xf] %vm4876_vm7, %v2017_v31  ;;  %v3208_v48 = vpop.permute.xlu0 %3207 }
 0x8d8   :  { %v2034_v14 = vsel %vm836_vm8, %v2032_v41, %v2033_v10  ;;  %v3209_v51 = vrot.slane %v3208_v48, 2 }
 0x8d9   :  { %3590 = vst.msk [vmem:[%s4932_s11 + $0x4] sm:$0xf] %vm4876_vm7, %v2034_v14  ;;  %v3225_v35 = vpop.permute.xlu1 %3224 }
 0x8da   :  { %v3210_v62 = vsel %vm404_vm0, %v3208_v48, %v3209_v51  ;;  %v3226_v54 = vrot.slane %v3225_v35, 2 }
 0x8db   :  { %3733 = vst.msk [vmem:[%s4931_s10 + $0x8] sm:$0xf] %vm4876_vm7, %v3210_v62 }
 0x8dc   :  { %v3227_v56 = vsel %vm836_vm8, %v3225_v35, %v3226_v54 }
 0x8dd   :  { %3734 = vst.msk [vmem:[%s4932_s11 + $0x8] sm:$0xf] %vm4876_vm7, %v3227_v56 }
 0x98f   :  { %v3359_v60 = vpop.f32.mrf.mxu1 }
 0x990   :  { %v3365_v61 = vadd.f32 %v3359_v60, %v4764_v19 }
 0x991   :  { %v3361_v4 = vpop.f32.mrf.mxu1 }
 0x992   :  { %v3370_v5 = vand.u32 2147483647, %v3365_v61  ;;  %v3369_v44 = vmax.f32 %v3365_v61, 0.0 }
 0x993   :  { %v3362_v8 = vpop.f32.mrf.mxu1 }
 0x994   :  { %v3371_v32 = vsub.f32 0.0, %v3370_v5 }
 0x995   :  { %v3363_v52 = vpop.f32.mrf.mxu1 }
 0x996   :  { %v3372_v33 = vmul.f32 1.442695, %v3371_v32 }
 0x998   :  { %4254 = vpow2.f32 %v3372_v33 }
 0x9a5   :  { %v4255_v55 = vpop.eup %4254 }
 0x9a6   :  { %v3374_v11 = vadd.f32 1.0, %v4255_v55  ;;  %v3377_v13 = vmul.f32 -0.5, %v4255_v55  ;;  %v3380_v16 = vand.u32 2147483647, %v4255_v55 }
 0x9a8   :  { %4256 = vlog2.f32 %v3374_v11  ;;  %v3378_v1 = vadd.f32 1.0, %v3377_v13  ;;  %vm3381_vm9 = vcmp.lt.f32.partialorder %v3380_v16, 0.0004427343 }
 0x9aa   :  { %v3379_v18 = vmul.f32 %v4255_v55, %v3378_v1 }
 0x9b5   :  { %v4257_v9 = vpop.eup %4256 }
 0x9b6   :  { %v3376_v50 = vmul.f32 0.6931472, %v4257_v9 }
 0x9b8   :  { %v3382_v19 = vsel %vm3381_vm9, %v3379_v18, %v3376_v50 }
 0x9b9   :  { %v3383_v2 = vadd.f32 %v3382_v19, %v3369_v44 }
 0x9bb   :  { %v3384_v53 = vsel %vm3368_vm10, %v3365_v61, %v3383_v2 }
 0x9bc   :  { %3386 = vst.msk [vmem:[%s4930_s9] sm:$0x3] %vm3385_vm11, %v3384_v53 }
 0x9bd   :  { %3399 = vsyncpa [#allocation3], 1 }
 0x9be   :  { %3400 = vsyncpa [#allocation5], 1 }

</bundles_post_ra>
